<compile_context>
chip_gen: v5e
topology: v5e:2x2
jax: 0.10.0
libtpu: 0.0.40
codegen_flags: <defaults>
</compile_context>

<pallas_src>
import functools

import jax
import jax.numpy as jnp
from jax.experimental import pallas as pl
from jax.experimental.pallas import tpu as pltpu

K = 5      # kernel_size: must be 5 so padding=2 preserves length (residual add)
PAD = 2


def _resblock_kernel(x_ref, w1_ref, b1_ref, w2_ref, b2_ref, o_ref, *, L_seg):
    # x_ref : (NB, C, L)    input block, PyTorch NCL layout
    # w*_ref: (K*C_in, C_out) bf16 conv weights, rows tap-major (im2col RHS)
    # b*_ref: (1, C) f32
    # o_ref : (NB, L, C)    lane-dense NLC output block
    NB, C, L = x_ref.shape
    M = NB * L_seg                        # flat row count; multiple of 8

    zpad = jnp.zeros((L_seg - L, C), jnp.float32)

    # Per-batch channels-last tiles (pre-ReLU); reused later for the residual.
    x_lc = [jnp.transpose(x_ref[b].astype(jnp.float32)) for b in range(NB)]

    # Flat channels-last activation after the first ReLU.
    #   rows [b*L_seg, b*L_seg+L)      -> relu(x[b]).T
    #   rows [b*L_seg+L, (b+1)*L_seg)  -> zeros (conv halo + sublane alignment)
    # All piece boundaries are multiples of 8 -> clean sublane concat.
    pieces = []
    for b in range(NB):
        pieces.append(jnp.maximum(x_lc[b], 0.0))
        pieces.append(zpad)
    h1 = jnp.concatenate(pieces, axis=0)              # (M, C)

    # Rows whose within-segment index is a real token (re-zero halos for conv2).
    rows = jax.lax.broadcasted_iota(jnp.int32, (M, 1), 0)
    valid = (rows % L_seg) < L

    def conv(h, w_ref, b_ref):
        # 'same' conv over every segment as ONE MXU dot on an im2col LHS.
        # Tap t needs h[r + t - PAD]; built with XLU sublane rolls.  Valid
        # output rows (in-segment index < L) only ever read this segment's
        # data rows or zero rows: the leading halo is the previous segment's
        # (or, via wraparound, the last segment's) trailing zero rows, and the
        # trailing halo is this segment's own zero rows.
        taps = []
        for t in range(K):
            d = t - PAD                               # tap offset in [-2, 2]
            ht = h if d == 0 else pltpu.roll(h, shift=(-d) % M, axis=0)
            taps.append(ht.astype(jnp.bfloat16))
        lhs = jnp.concatenate(taps, axis=1)           # (M, K*C), lane-aligned
        return jnp.dot(lhs, w_ref[...],
                       preferred_element_type=jnp.float32) + b_ref[...]

    y1 = conv(h1, w1_ref, b1_ref)
    h2 = jnp.where(valid, jnp.maximum(y1, 0.0), 0.0)  # ReLU + re-zero halos
    y2 = conv(h2, w2_ref, b2_ref)

    # Residual in NLC layout: lane-dense (L, C) stores, no output transposes.
    for b in range(NB):
        s = b * L_seg                                 # static, 8-aligned start
        yb = y2[s:s + L, :]
        o_ref[b] = (0.3 * yb + x_lc[b]).astype(o_ref.dtype)


def _choose_batch_fold(N, L_seg, target_rows=384):
    """Pick NB (batch elems folded per grid step) and the padded batch Np."""
    cap = max(1, target_rows // L_seg)     # aim for M = NB*L_seg in ~[256, 512]
    if N >= 2:
        cap = min(cap, N // 2)             # keep >= 2 grid steps (v7x megacore)
    cap = max(1, min(cap, N))
    best = 1
    for d in range(cap, 0, -1):            # largest divisor of N within range
        if N % d == 0:
            best = d
            break
    if 2 * best >= cap:                    # good enough divisor: no padding
        return best, N
    # Awkward N (e.g. prime): pad the batch instead of collapsing to tiny M.
    return cap, ((N + cap - 1) // cap) * cap


def resblock_pallas(x_ncl, w1, b1, w2, b2, *, target_rows=384):
    """x_ncl: (N, C, L); w*: (C_out, C_in, K) PyTorch Conv1d layout; b*: (C,)."""
    N, C, L = x_ncl.shape
    L_seg = ((L + PAD + 7) // 8) * 8       # per-batch stride: >= L+PAD, 8-aligned

    NB, Np = _choose_batch_fold(N, L_seg, target_rows)
    x_in = x_ncl if Np == N else jnp.pad(x_ncl, ((0, Np - N), (0, 0), (0, 0)))
    grid = (Np // NB,)

    # One-time weight/bias repack (tiny): (C_out, C_in, K) -> (K*C_in, C_out),
    # rows tap-major to match the im2col lane order; bf16 for the MXU.
    w1k = jnp.transpose(w1, (2, 1, 0)).reshape(K * C, C).astype(jnp.bfloat16)
    w2k = jnp.transpose(w2, (2, 1, 0)).reshape(K * C, C).astype(jnp.bfloat16)
    b1r = b1.reshape(1, C).astype(jnp.float32)
    b2r = b2.reshape(1, C).astype(jnp.float32)

    kernel = functools.partial(_resblock_kernel, L_seg=L_seg)

    out_nlc = pl.pallas_call(
        kernel,
        out_shape=jax.ShapeDtypeStruct((Np, L, C), x_ncl.dtype),  # lane-dense NLC
        grid_spec=pltpu.PrefetchScalarGridSpec(
            num_scalar_prefetch=0,
            grid=grid,
            in_specs=[
                pl.BlockSpec((NB, C, L), lambda n: (n, 0, 0)),    # x (NCL block)
                pl.BlockSpec((K * C, C), lambda n: (0, 0)),       # w1 (resident)
                pl.BlockSpec((1, C), lambda n: (0, 0)),           # b1
                pl.BlockSpec((K * C, C), lambda n: (0, 0)),       # w2 (resident)
                pl.BlockSpec((1, C), lambda n: (0, 0)),           # b2
            ],
            out_specs=pl.BlockSpec((NB, L, C), lambda n: (n, 0, 0)),
        ),
        compiler_params=pltpu.CompilerParams(
            dimension_semantics=("parallel",)),
    )(x_in, w1k, b1r, w2k, b2r)

    out = jnp.transpose(out_nlc, (0, 2, 1))            # cheap XLA NLC -> NCL fix
    return out if Np == N else out[:N]


def resblock_ref(x, w1, b1, w2, b2):
    """Pure-JAX f32 reference matching PyTorch semantics (NCL / OIK layout)."""
    def conv1d(h, w, b):
        out = jax.lax.conv_general_dilated(
            h, w, window_strides=(1,), padding=[(PAD, PAD)],
            dimension_numbers=("NCH", "OIH", "NCH"))
        return out + b[None, :, None]
    h = jax.nn.relu(x)
    h = conv1d(h, w1, b1)
    h = jax.nn.relu(h)
    h = conv1d(h, w2, b2)
    return 0.3 * h + x


if __name__ == "__main__":
    # Small shapes consistent with the module: batch=4, model_dim=128, seq=16.
    N, C, L = 4, 128, 16
    key = jax.random.PRNGKey(0)
    kx, kw1, kb1, kw2, kb2 = jax.random.split(key, 5)

    x = jax.random.normal(kx, (N, C, L), dtype=jnp.float32)
    # PyTorch Conv1d parameter shapes: (C_out, C_in, K).
    scale = 1.0 / jnp.sqrt(C * K)
    w1 = jax.random.normal(kw1, (C, C, K), dtype=jnp.float32) * scale
    b1 = jax.random.normal(kb1, (C,), dtype=jnp.float32) * scale
    w2 = jax.random.normal(kw2, (C, C, K), dtype=jnp.float32) * scale
    b2 = jax.random.normal(kb2, (C,), dtype=jnp.float32) * scale

    out = jax.block_until_ready(resblock_pallas(x, w1, b1, w2, b2))
    ref = jax.block_until_ready(resblock_ref(x, w1, b1, w2, b2))

    assert out.shape == (N, C, L) and out.dtype == x.dtype
    # bf16 MXU operands with f32 accumulation (deliberate precision trade).
    assert jnp.allclose(out, ref, atol=2e-2, rtol=2e-2), (
        f"max abs err {jnp.max(jnp.abs(out - ref))}")
    print("KERNEL_OK")
</pallas_src>

<mosaic_0001>
module attributes {stable_mosaic.version = 11 : i64} {
  func.func @_resblock_kernel(%arg0: i32, %arg1: memref<2x128x16xf32, #tpu.memory_space<vmem>>, %arg2: memref<640x128xbf16, #tpu.memory_space<vmem>>, %arg3: memref<1x128xf32, #tpu.memory_space<vmem>>, %arg4: memref<640x128xbf16, #tpu.memory_space<vmem>>, %arg5: memref<1x128xf32, #tpu.memory_space<vmem>>, %arg6: memref<2x16x128xf32, #tpu.memory_space<vmem>>) attributes {dimension_semantics = [#tpu.dimension_semantics<parallel>], iteration_bounds = array<i64: 2>, scalar_prefetch = 0 : i64, scratch_operands = 0 : i64, tpu.core_type = #tpu.core_type<tc>, window_params = [{transform_indices = @transform_0, window_bounds = array<i64: 2, 128, 16>}, {pipeline_mode = #tpu.pipeline_mode<synchronous>, transform_indices = @transform_1, window_bounds = array<i64: 640, 128>}, {pipeline_mode = #tpu.pipeline_mode<synchronous>, transform_indices = @transform_2, window_bounds = array<i64: 1, 128>}, {pipeline_mode = #tpu.pipeline_mode<synchronous>, transform_indices = @transform_3, window_bounds = array<i64: 640, 128>}, {pipeline_mode = #tpu.pipeline_mode<synchronous>, transform_indices = @transform_4, window_bounds = array<i64: 1, 128>}, {transform_indices = @transform_5, window_bounds = array<i64: 2, 16, 128>}]} {
    %cst = arith.constant 0.000000e+00 : f32
    %0 = vector.broadcast %cst : f32 to vector<8x128xf32>
    %c0 = arith.constant 0 : index
    %c0_0 = arith.constant 0 : index
    %c0_1 = arith.constant 0 : index
    %1 = vector.load %arg1[%c0, %c0_0, %c0_1] : memref<2x128x16xf32, #tpu.memory_space<vmem>>, vector<1x128x16xf32>
    %2 = vector.shape_cast %1 : vector<1x128x16xf32> to vector<128x16xf32>
    %3 = tpu.transpose %2, [1, 0] : vector<128x16xf32> -> vector<16x128xf32>
    %c1 = arith.constant 1 : index
    %c0_2 = arith.constant 0 : index
    %c0_3 = arith.constant 0 : index
    %4 = vector.load %arg1[%c1, %c0_2, %c0_3] : memref<2x128x16xf32, #tpu.memory_space<vmem>>, vector<1x128x16xf32>
    %5 = vector.shape_cast %4 : vector<1x128x16xf32> to vector<128x16xf32>
    %6 = tpu.transpose %5, [1, 0] : vector<128x16xf32> -> vector<16x128xf32>
    %cst_4 = arith.constant 0.000000e+00 : f32
    %7 = vector.broadcast %cst_4 : f32 to vector<16x128xf32>
    %8 = arith.maximumf %3, %7 : vector<16x128xf32>
    %cst_5 = arith.constant 0.000000e+00 : f32
    %9 = vector.broadcast %cst_5 : f32 to vector<16x128xf32>
    %10 = arith.maximumf %6, %9 : vector<16x128xf32>
    %11 = tpu.concatenate %8, %0, %10, %0 in 0 : vector<16x128xf32>, vector<8x128xf32>, vector<16x128xf32>, vector<8x128xf32> -> vector<48x128xf32>
    %12 = tpu.iota {dimensions = array<i32: 0>} : vector<48x1xi32>
    %c24_i32 = arith.constant 24 : i32
    %c0_i32 = arith.constant 0 : i32
    %13 = arith.cmpi eq, %c24_i32, %c0_i32 : i32
    %c1_i32 = arith.constant 1 : i32
    %14 = arith.select %13, %c1_i32, %c24_i32 : i32
    %15 = vector.broadcast %14 : i32 to vector<48x1xi32>
    %16 = arith.remsi %12, %15 : vector<48x1xi32>
    %c0_i32_6 = arith.constant 0 : i32
    %17 = vector.broadcast %c0_i32_6 : i32 to vector<48x1xi32>
    %18 = arith.cmpi ne, %16, %17 : vector<48x1xi32>
    %c0_i32_7 = arith.constant 0 : i32
    %19 = vector.broadcast %c0_i32_7 : i32 to vector<48x1xi32>
    %20 = arith.cmpi slt, %16, %19 : vector<48x1xi32>
    %c0_i32_8 = arith.constant 0 : i32
    %21 = arith.cmpi slt, %14, %c0_i32_8 : i32
    %22 = vector.broadcast %21 : i1 to vector<48x1xi1>
    %23 = vector.broadcast %22 : vector<48x1xi1> to vector<48x1xi1>
    %24 = arith.xori %20, %23 : vector<48x1xi1>
    %25 = arith.andi %24, %18 : vector<48x1xi1>
    %26 = vector.broadcast %14 : i32 to vector<48x1xi32>
    %27 = arith.addi %16, %26 : vector<48x1xi32>
    %28 = arith.select %25, %27, %16 : vector<48x1xi1>, vector<48x1xi32>
    %c16_i32 = arith.constant 16 : i32
    %29 = vector.broadcast %c16_i32 : i32 to vector<48x1xi32>
    %30 = arith.cmpi slt, %28, %29 : vector<48x1xi32>
    %c2_i32 = arith.constant 2 : i32
    %31 = tpu.dynamic_rotate %11 by %c2_i32 dim 0 : vector<48x128xf32>, i32 -> vector<48x128xf32>
    %32 = arith.truncf %31 : vector<48x128xf32> to vector<48x128xbf16>
    %c1_i32_9 = arith.constant 1 : i32
    %33 = tpu.dynamic_rotate %11 by %c1_i32_9 dim 0 : vector<48x128xf32>, i32 -> vector<48x128xf32>
    %34 = arith.truncf %33 : vector<48x128xf32> to vector<48x128xbf16>
    %35 = arith.truncf %11 : vector<48x128xf32> to vector<48x128xbf16>
    %c47_i32 = arith.constant 47 : i32
    %36 = tpu.dynamic_rotate %11 by %c47_i32 dim 0 : vector<48x128xf32>, i32 -> vector<48x128xf32>
    %37 = arith.truncf %36 : vector<48x128xf32> to vector<48x128xbf16>
    %c46_i32 = arith.constant 46 : i32
    %38 = tpu.dynamic_rotate %11 by %c46_i32 dim 0 : vector<48x128xf32>, i32 -> vector<48x128xf32>
    %39 = arith.truncf %38 : vector<48x128xf32> to vector<48x128xbf16>
    %40 = tpu.concatenate %32, %34, %35, %37, %39 in 1 : vector<48x128xbf16>, vector<48x128xbf16>, vector<48x128xbf16>, vector<48x128xbf16>, vector<48x128xbf16> -> vector<48x640xbf16>
    %c0_10 = arith.constant 0 : index
    %c0_11 = arith.constant 0 : index
    %41 = vector.load %arg2[%c0_10, %c0_11] : memref<640x128xbf16, #tpu.memory_space<vmem>>, vector<640x128xbf16>
    %cst_12 = arith.constant dense<0.000000e+00> : vector<48x128xf32>
    %42 = tpu.matmul %40, %41, %cst_12 {dimension_numbers = #tpu.dot_dimension_numbers<[1], [0], [0], [1], [0, 0, 1, 1], [], []>} : vector<48x640xbf16>, vector<640x128xbf16>, vector<48x128xf32> -> vector<48x128xf32>
    %c0_13 = arith.constant 0 : index
    %c0_14 = arith.constant 0 : index
    %43 = vector.load %arg3[%c0_13, %c0_14] : memref<1x128xf32, #tpu.memory_space<vmem>>, vector<1x128xf32>
    %44 = vector.broadcast %43 : vector<1x128xf32> to vector<48x128xf32>
    %45 = arith.addf %42, %44 : vector<48x128xf32>
    %cst_15 = arith.constant 0.000000e+00 : f32
    %46 = vector.broadcast %cst_15 : f32 to vector<48x128xf32>
    %47 = arith.maximumf %45, %46 : vector<48x128xf32>
    %cst_16 = arith.constant 0.000000e+00 : f32
    %48 = vector.shape_cast %30 : vector<48x1xi1> to vector<48x1xi1>
    %49 = vector.broadcast %48 : vector<48x1xi1> to vector<48x128xi1>
    %50 = vector.broadcast %cst_16 : f32 to vector<48x128xf32>
    %51 = arith.select %49, %47, %50 : vector<48x128xi1>, vector<48x128xf32>
    %c2_i32_17 = arith.constant 2 : i32
    %52 = tpu.dynamic_rotate %51 by %c2_i32_17 dim 0 : vector<48x128xf32>, i32 -> vector<48x128xf32>
    %53 = arith.truncf %52 : vector<48x128xf32> to vector<48x128xbf16>
    %c1_i32_18 = arith.constant 1 : i32
    %54 = tpu.dynamic_rotate %51 by %c1_i32_18 dim 0 : vector<48x128xf32>, i32 -> vector<48x128xf32>
    %55 = arith.truncf %54 : vector<48x128xf32> to vector<48x128xbf16>
    %56 = arith.truncf %51 : vector<48x128xf32> to vector<48x128xbf16>
    %c47_i32_19 = arith.constant 47 : i32
    %57 = tpu.dynamic_rotate %51 by %c47_i32_19 dim 0 : vector<48x128xf32>, i32 -> vector<48x128xf32>
    %58 = arith.truncf %57 : vector<48x128xf32> to vector<48x128xbf16>
    %c46_i32_20 = arith.constant 46 : i32
    %59 = tpu.dynamic_rotate %51 by %c46_i32_20 dim 0 : vector<48x128xf32>, i32 -> vector<48x128xf32>
    %60 = arith.truncf %59 : vector<48x128xf32> to vector<48x128xbf16>
    %61 = tpu.concatenate %53, %55, %56, %58, %60 in 1 : vector<48x128xbf16>, vector<48x128xbf16>, vector<48x128xbf16>, vector<48x128xbf16>, vector<48x128xbf16> -> vector<48x640xbf16>
    %c0_21 = arith.constant 0 : index
    %c0_22 = arith.constant 0 : index
    %62 = vector.load %arg4[%c0_21, %c0_22] : memref<640x128xbf16, #tpu.memory_space<vmem>>, vector<640x128xbf16>
    %cst_23 = arith.constant dense<0.000000e+00> : vector<48x128xf32>
    %63 = tpu.matmul %61, %62, %cst_23 {dimension_numbers = #tpu.dot_dimension_numbers<[1], [0], [0], [1], [0, 0, 1, 1], [], []>} : vector<48x640xbf16>, vector<640x128xbf16>, vector<48x128xf32> -> vector<48x128xf32>
    %c0_24 = arith.constant 0 : index
    %c0_25 = arith.constant 0 : index
    %64 = vector.load %arg5[%c0_24, %c0_25] : memref<1x128xf32, #tpu.memory_space<vmem>>, vector<1x128xf32>
    %65 = vector.broadcast %64 : vector<1x128xf32> to vector<48x128xf32>
    %66 = arith.addf %63, %65 : vector<48x128xf32>
    %67 = vector.extract_strided_slice %66 {offsets = [0, 0], sizes = [16, 128], strides = [1, 1]} : vector<48x128xf32> to vector<16x128xf32>
    %cst_26 = arith.constant 3.000000e-01 : f32
    %68 = vector.broadcast %cst_26 : f32 to vector<16x128xf32>
    %69 = arith.mulf %68, %67 : vector<16x128xf32>
    %70 = arith.addf %69, %3 : vector<16x128xf32>
    %c0_27 = arith.constant 0 : index
    %c0_28 = arith.constant 0 : index
    %c0_29 = arith.constant 0 : index
    %71 = vector.load %arg6[%c0_27, %c0_28, %c0_29] : memref<2x16x128xf32, #tpu.memory_space<vmem>>, vector<1x16x128xf32>
    %72 = vector.shape_cast %71 : vector<1x16x128xf32> to vector<16x128xf32>
    %73 = vector.shape_cast %70 : vector<16x128xf32> to vector<1x16x128xf32>
    tpu.vector_store %arg6[%c0_27, %c0_28, %c0_29], %73 {strides = array<i32>} : memref<2x16x128xf32, #tpu.memory_space<vmem>>, vector<1x16x128xf32>,
    %74 = vector.extract_strided_slice %66 {offsets = [24, 0], sizes = [16, 128], strides = [1, 1]} : vector<48x128xf32> to vector<16x128xf32>
    %cst_30 = arith.constant 3.000000e-01 : f32
    %75 = vector.broadcast %cst_30 : f32 to vector<16x128xf32>
    %76 = arith.mulf %75, %74 : vector<16x128xf32>
    %77 = arith.addf %76, %6 : vector<16x128xf32>
    %c1_31 = arith.constant 1 : index
    %c0_32 = arith.constant 0 : index
    %c0_33 = arith.constant 0 : index
    %78 = vector.load %arg6[%c1_31, %c0_32, %c0_33] : memref<2x16x128xf32, #tpu.memory_space<vmem>>, vector<1x16x128xf32>
    %79 = vector.shape_cast %78 : vector<1x16x128xf32> to vector<16x128xf32>
    %80 = vector.shape_cast %77 : vector<16x128xf32> to vector<1x16x128xf32>
    tpu.vector_store %arg6[%c1_31, %c0_32, %c0_33], %80 {strides = array<i32>} : memref<2x16x128xf32, #tpu.memory_space<vmem>>, vector<1x16x128xf32>,
    return
  }
  func.func @transform_0(%arg0: i32) -> (i32, i32, i32) {
    %c0_i32 = arith.constant 0 : i32
    %c0_i32_0 = arith.constant 0 : i32
    %c0_i32_1 = arith.constant 0 : i32
    return %arg0, %c0_i32, %c0_i32_0 : i32, i32, i32
  }
  func.func @transform_1(%arg0: i32) -> (i32, i32) {
    %c0_i32 = arith.constant 0 : i32
    %c0_i32_0 = arith.constant 0 : i32
    %c0_i32_1 = arith.constant 0 : i32
    return %c0_i32, %c0_i32_0 : i32, i32
  }
  func.func @transform_2(%arg0: i32) -> (i32, i32) {
    %c0_i32 = arith.constant 0 : i32
    %c0_i32_0 = arith.constant 0 : i32
    %c0_i32_1 = arith.constant 0 : i32
    return %c0_i32, %c0_i32_0 : i32, i32
  }
  func.func @transform_3(%arg0: i32) -> (i32, i32) {
    %c0_i32 = arith.constant 0 : i32
    %c0_i32_0 = arith.constant 0 : i32
    %c0_i32_1 = arith.constant 0 : i32
    return %c0_i32, %c0_i32_0 : i32, i32
  }
  func.func @transform_4(%arg0: i32) -> (i32, i32) {
    %c0_i32 = arith.constant 0 : i32
    %c0_i32_0 = arith.constant 0 : i32
    %c0_i32_1 = arith.constant 0 : i32
    return %c0_i32, %c0_i32_0 : i32, i32
  }
  func.func @transform_5(%arg0: i32) -> (i32, i32, i32) {
    %c0_i32 = arith.constant 0 : i32
    %c0_i32_0 = arith.constant 0 : i32
    %c0_i32_1 = arith.constant 0 : i32
    return %arg0, %c0_i32, %c0_i32_0 : i32, i32, i32
  }
}

</mosaic_0001>

<bundles_post_ra>
// kernel: tpu_custom_call.1
= control target key start
LH: loop header
LB: loop body
LE: loop exit
PB: predicated region body
PF: predicated region fallthrough
CT: control target
= control target key end

     0   :  { %10 = vsyncpa [#allocation3], 0  ;;  %s3200_s0 = inlined_call_operand.vmem [shape: f32[4,128,16], index: 0, kind: input, shape index: {}]   ;;  %s3201_s1 = inlined_call_operand.vmem [shape: bf16[640,128], index: 1, kind: input, shape index: {}]   ;;  %s3202_s2 = inlined_call_operand.vmem [shape: f32[1,128], index: 2, kind: input, shape index: {}]   ;;  %s3203_s3 = inlined_call_operand.hbm [shape: bf16[640,128], index: 3, kind: input, shape index: {}]   ;;  %s3204_s4 = inlined_call_operand.vmem [shape: f32[1,128], index: 4, kind: input, shape index: {}]   ;;  %s3205_s5 = inlined_call_operand.hbm [shape: f32[4,16,128], index: 5, kind: output, shape index: {}]  }
   0x1   :  { %11 = vsyncpa [#allocation4], 0 }
   0x2   :  { %13 = vsyncpa [#allocation4 + $0x1], 0  ;;  %s2545_s18 = smov 0   ;;  %s2547_s19 = smov 0  }
   0x3   :  { %s2549_s20 = smov 0   ;;  %s2551_s21 = smov 0  }
   0x4 LB: > { %s2566_s22 = sadd.s32 4294967295, %s2506_s21   ;;  %s1899_s23 = sadd.s32 4294967294, %s2506_s21   ;;  %s2506_s21 = sphi %s2551_s21, %s3221_s21   ;;  %s2502_s20 = sphi %s2549_s20, %s3220_s20   ;;  %s2498_s19 = sphi %s2547_s19, %s3219_s19   ;;  %s2494_s18 = sphi %s2545_s18, %s3218_s18  }
   0x5   : > { %s2570_s24 = sadd.s32 1, %s2506_s21   ;;  %s136_s25 = sadd.s32 1, %s2502_s20 }
   0x6   : > { %s133_s26 = ssub.s32 %s2506_s21, %s2570_s24  ;;  %p146_p0 = scmp.ne.s32.totalorder %s2502_s20, %s2498_s19 }
   0x7   : > { %p134_p1 = scmp.eq.s32.totalorder %s133_s26, 0  ;;  %p147_p2 = scmp.eq.s32.totalorder %s2566_s22, 1 }
   0x8   : > { %p152_p3 = scmp.ne.s32.totalorder %s2498_s19, %s2494_s18  ;;  %p153_p4 = scmp.eq.s32.totalorder %s1899_s23, 1 }
   0x9   : > { %s2581_s27 = scalar_select %p134_p1, %s2502_s20, %s136_s25  }
   0xa   : > { %p2583_p5 = por %p147_p2, %p146_p0  ;;  %p2587_p6 = por %p153_p4, %p152_p3 }
   0xb   : > { %p1900_p7 = scmp.ge.s32.totalorder %s2506_s21, 1  ;;  %p160_p8 = scmp.lt.s32.totalorder %s2506_s21, 3 }
   0xc   : > { %p2366_p9 = scmp.eq.s32.totalorder %s2566_s22, 0  ;;  %s177_s7 = sshll.u32 %s3203_s3, 4  ;;  %s178_s7 = int_to_ptr.hbm [resolvable:$true] %s177_s7 }
   0xd   : > { %p161_p10 = pnand %p1900_p7, %p160_p8  ;;  %s2508_s8 = smov [#allocation2]  }
   0xe   : > { %s179_s9 = sshll.u32 %s2508_s8, 4  ;;  %s2509_s10 = smov 64   ;;  %s180_s9 = int_to_ptr.vmem [resolvable:$true] %s179_s9 }
   0xf   : > { %p2358_p11 = pneg %p161_p10  ;;  %s2510_s11 = smov 4  }
  0x10   : > { %208 = sbr.rel (%p161_p10) target bundleno = 643 (0x283), region = 40 }
  0x11   : > { %p2359_p12 = pnand %p2366_p9, %p2358_p11 }
  0x13   : > { %2361 = dma.hbm_to_vmem [thread:$0]  (!%p2359_p12), %s178_s7, 5120, %s180_s9, [#allocation3], %s2509_s10, %s2509_s10, %s2510_s11  }
  0x15   : > { %2485 = dma.done.wait (%p2366_p9), [#allocation3], 5120  }
  0x16   : > { %2487 = vsyncadd (%p2366_p9), [#allocation3], 4294962176  ;;  %s1906_s12 = sshll.u32 %s2566_s22, 1  ;;  %v2261_v24 = vld [vmem:[%s3201_s1 + $0x38] sm:$0xff]  ;;  %v2260_v26 = vld [vmem:[%s3201_s1 + $0x30] sm:$0xff]  ;;  %v347_v62 = vlaneseq  ;;  %s2335_s9 = sshll.u32 %s2566_s22, 5 }
  0x17   : > { %p239_p13 = scmp.lt.s32.totalorder %s1906_s12, 3  ;;  %v2269_v25 = vld [vmem:[%s3201_s1 + $0x78] sm:$0xff]  ;;  %2336 = vmatpush.bf16.msra.mxu2 %v2261_v24  ;;  %v2268_v27 = vld [vmem:[%s3201_s1 + $0x70] sm:$0xff]  ;;  %1049 = vmatpush.bf16.msra.mxu0 %v2261_v24  ;;  %v2259_v30 = vld [vmem:[%s3201_s1 + $0x28] sm:$0xff]  ;;  %s2460_s26 = scalar_lea.hbm %s3205_s5, 64 }
  0x18   : > { %2344 = vmatpush.bf16.msra.mxu3 %v2269_v25  ;;  %1073 = vmatpush.bf16.msra.mxu1 %v2269_v25  ;;  %v2267_v31 = vld [vmem:[%s3201_s1 + $0x68] sm:$0xff]  ;;  %v2258_v32 = vld [vmem:[%s3201_s1 + $0x20] sm:$0xff]  ;;  %v2257_v36 = vld [vmem:[%s3201_s1 + $0x18] sm:$0xff] }
  0x19   : > { %s3223_s12 = smov (!%p239_p13, %s1906_s12), 3  ;;  %v2266_v33 = vld [vmem:[%s3201_s1 + $0x60] sm:$0xff]  ;;  %v2265_v37 = vld [vmem:[%s3201_s1 + $0x58] sm:$0xff]  ;;  %v2256_v38 = vld [vmem:[%s3201_s1 + $0x10] sm:$0xff] }
  0x1a   : > { %s2253_s13 = sshll.u32 %s3223_s12, 7  ;;  %v2264_v39 = vld [vmem:[%s3201_s1 + $0x50] sm:$0xff]  ;;  %v2255_v42 = vld [vmem:[%s3201_s1 + $0x8] sm:$0xff]  ;;  %v2254_v46 = vld [vmem:[%s3201_s1] sm:$0xff]  ;;  %s1821_s12 = scalar_lea.hbm %s3205_s5, %s2335_s9 }
  0x1b   : > { %s2607_s16 = scalar_lea.vmem %s3200_s0, %s2253_s13  ;;  %2337 = vmatpush.bf16.msra.mxu2 %v2260_v26  ;;  %1050 = vmatpush.bf16.msra.mxu0 %v2260_v26  ;;  %v2263_v43 = vld [vmem:[%s3201_s1 + $0x48] sm:$0xff]  ;;  %v2262_v47 = vld [vmem:[%s3201_s1 + $0x40] sm:$0xff]  ;;  %v2277_v48 = vld [vmem:[%s3201_s1 + $0xb8] sm:$0xff]  ;;  %s1824_s14 = sshll.u32 %s1821_s12, 4  ;;  %s1825_s14 = int_to_ptr.hbm [resolvable:$true] %s1824_s14 }
  0x1c   : > { %v1909_v0 = vld [vmem:[%s2607_s16 + $0x80] sm:$0xff]  ;;  %v1910_v2 = vld [vmem:[%s2607_s16 + $0x88] sm:$0xff]  ;;  %v1911_v4 = vld [vmem:[%s2607_s16 + $0x90] sm:$0xff]  ;;  %2345 = vmatpush.bf16.msra.mxu3 %v2268_v27  ;;  %1074 = vmatpush.bf16.msra.mxu1 %v2268_v27  ;;  %s2454_s15 = sshra.s32 %s1825_s14, 4  ;;  %s2455_s15 = int_to_ptr.hbm [resolvable:$true] %s2454_s15 }
  0x1d   : > { %v246_v1 = vld [vmem:[%s2607_s16] sm:$0xff]  ;;  %311 = vxpose.xlu1.b32.start [1/16] (narrow) %v1909_v0, 16  ;;  %v247_v3 = vld [vmem:[%s2607_s16 + $0x8] sm:$0xff]  ;;  %v248_v5 = vld [vmem:[%s2607_s16 + $0x10] sm:$0xff]  ;;  %s2456_s17 = scalar_lea.hbm %s2455_s15, 32  ;;  %p2461_p3 = scmp.lt.s32.totalorder %s2455_s15, %s3205_s5 }
  0x1e   : > { %262 = vxpose.xlu0.b32.start [1/16] (narrow) %v246_v1, 16  ;;  %v1912_v6 = vld [vmem:[%s2607_s16 + $0x98] sm:$0xff]  ;;  %v1913_v8 = vld [vmem:[%s2607_s16 + $0xa0] sm:$0xff]  ;;  %v1914_v10 = vld [vmem:[%s2607_s16 + $0xa8] sm:$0xff]  ;;  %p2457_p0 = scmp.ne.s32.totalorder %s2455_s15, %s2456_s17  ;;  %p2462_p4 = scmp.lt.s32.totalorder %s2460_s26, %s2456_s17 }
  0x1f   : > { %v249_v7 = vld [vmem:[%s2607_s16 + $0x18] sm:$0xff]  ;;  %v250_v9 = vld [vmem:[%s2607_s16 + $0x20] sm:$0xff]  ;;  %v251_v11 = vld [vmem:[%s2607_s16 + $0x28] sm:$0xff]  ;;  %2338 = vmatpush.bf16.msra.mxu2 %v2259_v30  ;;  %1051 = vmatpush.bf16.msra.mxu0 %v2259_v30 }
  0x20   : > { %v1915_v12 = vld [vmem:[%s2607_s16 + $0xb0] sm:$0xff]  ;;  %v1916_v14 = vld [vmem:[%s2607_s16 + $0xb8] sm:$0xff]  ;;  %v1917_v16 = vld [vmem:[%s2607_s16 + $0xc0] sm:$0xff]  ;;  %2346 = vmatpush.bf16.msra.mxu3 %v2267_v31  ;;  %1075 = vmatpush.bf16.msra.mxu1 %v2267_v31  ;;  %p2458_p1 = pnand %p2457_p0, %p2583_p5  ;;  %p2463_p7 = por %p2462_p4, %p2461_p3 }
  0x21   : > { %v252_v13 = vld [vmem:[%s2607_s16 + $0x30] sm:$0xff]  ;;  %v253_v15 = vld [vmem:[%s2607_s16 + $0x38] sm:$0xff]  ;;  %v254_v17 = vld [vmem:[%s2607_s16 + $0x40] sm:$0xff] }
  0x22   : > { %v1918_v18 = vld [vmem:[%s2607_s16 + $0xc8] sm:$0xff]  ;;  %v1919_v20 = vld [vmem:[%s2607_s16 + $0xd0] sm:$0xff]  ;;  %v1920_v22 = vld [vmem:[%s2607_s16 + $0xd8] sm:$0xff]  ;;  %p2459_p2 = pneg %p2458_p1 }
  0x23   : > { %v255_v19 = vld [vmem:[%s2607_s16 + $0x48] sm:$0xff]  ;;  %v256_v21 = vld [vmem:[%s2607_s16 + $0x50] sm:$0xff]  ;;  %v257_v23 = vld [vmem:[%s2607_s16 + $0x58] sm:$0xff]  ;;  %2339 = vmatpush.bf16.msra.mxu2 %v2258_v32  ;;  %1052 = vmatpush.bf16.msra.mxu0 %v2258_v32 }
  0x24   : > { %v1921_v28 = vld [vmem:[%s2607_s16 + $0xe0] sm:$0xff]  ;;  %v1922_v34 = vld [vmem:[%s2607_s16 + $0xe8] sm:$0xff]  ;;  %2347 = vmatpush.bf16.msra.mxu3 %v2266_v33  ;;  %1076 = vmatpush.bf16.msra.mxu1 %v2266_v33  ;;  %v1923_v40 = vld [vmem:[%s2607_s16 + $0xf0] sm:$0xff]  ;;  %p2464_p8 = pnand %p2463_p7, %p2459_p2 }
  0x25   : > { %312 = vxpose.xlu1.b32.cont [2/16] (narrow) %v1910_v2, 16  ;;  %v258_v29 = vld [vmem:[%s2607_s16 + $0x60] sm:$0xff]  ;;  %v259_v35 = vld [vmem:[%s2607_s16 + $0x68] sm:$0xff]  ;;  %v260_v41 = vld [vmem:[%s2607_s16 + $0x70] sm:$0xff] }
  0x26   : > { %263 = vxpose.xlu0.b32.cont [2/16] (narrow) %v247_v3, 16  ;;  %v1924_v44 = vld [vmem:[%s2607_s16 + $0xf8] sm:$0xff]  ;;  %v2276_v50 = vld [vmem:[%s3201_s1 + $0xb0] sm:$0xff]  ;;  %v2275_v52 = vld [vmem:[%s3201_s1 + $0xa8] sm:$0xff] }
  0x27   : > { %2340 = vmatpush.bf16.msra.mxu2 %v2257_v36  ;;  %1053 = vmatpush.bf16.msra.mxu0 %v2257_v36  ;;  %v261_v45 = vld [vmem:[%s2607_s16 + $0x78] sm:$0xff]  ;;  %v2284_v51 = vld [vmem:[%s3201_s1 + $0xf0] sm:$0xff]  ;;  %v2283_v53 = vld [vmem:[%s3201_s1 + $0xe8] sm:$0xff]  ;;  %s235_s16 = sand.u32 1, %s2498_s19  }
  0x28   : > { %2348 = vmatpush.bf16.msra.mxu3 %v2265_v37  ;;  %1077 = vmatpush.bf16.msra.mxu1 %v2265_v37  ;;  %v2285_v49 = vld [vmem:[%s3201_s1 + $0xf8] sm:$0xff]  ;;  %v2274_v54 = vld [vmem:[%s3201_s1 + $0xa0] sm:$0xff]  ;;  %v2292_v59 = vld [vmem:[%s3201_s1 + $0x130] sm:$0xff]  ;;  %s1905_s7 = sshll.u32 %s235_s16, 5  ;;  %s1809_s22 = scalar_lea.sflag [#allocation4], %s235_s16 }
  0x29   : > { %v2282_v55 = vld [vmem:[%s3201_s1 + $0xe0] sm:$0xff]  ;;  %v2293_v56 = vld [vmem:[%s3201_s1 + $0x138] sm:$0xff]  ;;  %v2272_v60 = vld [vmem:[%s3201_s1 + $0x90] sm:$0xff]  ;;  %s237_s8 = scalar_lea.vmem [#allocation5], %s1905_s7 }
  0x2a   : > { %v2273_v57 = vld [vmem:[%s3201_s1 + $0x98] sm:$0xff]  ;;  %v2280_v61 = vld [vmem:[%s3201_s1 + $0xd0] sm:$0xff]  ;;  %v2291_v63 = vld [vmem:[%s3201_s1 + $0x128] sm:$0xff]  ;;  %s1822_s13 = sshll.u32 %s237_s8, 4  ;;  %s1823_s13 = int_to_ptr.vmem [resolvable:$true] %s1822_s13 }
  0x2b   : > { %2341 = vmatpush.bf16.msra.mxu2 %v2256_v38  ;;  %1054 = vmatpush.bf16.msra.mxu0 %v2256_v38  ;;  %v2281_v58 = vld [vmem:[%s3201_s1 + $0xd8] sm:$0xff]  ;;  %v2271_v0 = vld [vmem:[%s3201_s1 + $0x88] sm:$0xff] }
  0x2c   : > { %2349 = vmatpush.bf16.msra.mxu3 %v2264_v39  ;;  %1078 = vmatpush.bf16.msra.mxu1 %v2264_v39  ;;  %v2279_v1 = vld [vmem:[%s3201_s1 + $0xc8] sm:$0xff] }
  0x2d   : > { %313 = vxpose.xlu1.b32.cont [3/16] (narrow) %v1911_v4, 16  ;;  %v2744_v4 = vshrl.u32 %v347_v62, 7  ;;  %v2287_v32 = vld [vmem:[%s3201_s1 + $0x108] sm:$0xff] }
  0x2e   : > { %264 = vxpose.xlu0.b32.cont [3/16] (narrow) %v248_v5, 16  ;;  %v2290_v5 = vld [vmem:[%s3201_s1 + $0x120] sm:$0xff] }
  0x2f   : > { %2342 = vmatpush.bf16.msra.mxu2 %v2255_v42  ;;  %1055 = vmatpush.bf16.msra.mxu0 %v2255_v42  ;;  %vm568_vm0 = vcmp.lt.s32.totalorder %v2744_v4, 2  ;;  %vm585_vm1 = vcmp.lt.s32.totalorder %v2744_v4, 1  ;;  %vm607_vm2 = vcmp.lt.s32.totalorder %v2744_v4, 7  ;;  %vm624_vm3 = vcmp.lt.s32.totalorder %v2744_v4, 6 }
  0x30   : > { %2350 = vmatpush.bf16.msra.mxu3 %v2263_v43  ;;  %1079 = vmatpush.bf16.msra.mxu1 %v2263_v43 }
  0x33   : > { %2343 = vmatpush.bf16.msra.mxu2 %v2254_v46  ;;  %1056 = vmatpush.bf16.msra.mxu0 %v2254_v46 }
  0x34   : > { %2351 = vmatpush.bf16.msra.mxu3 %v2262_v47  ;;  %1080 = vmatpush.bf16.msra.mxu1 %v2262_v47 }
  0x35   : > { %314 = vxpose.xlu1.b32.cont [4/16] (narrow) %v1912_v6, 16  ;;  %v2270_v6 = vld [vmem:[%s3201_s1 + $0x80] sm:$0xff] }
  0x36   : > { %265 = vxpose.xlu0.b32.cont [4/16] (narrow) %v249_v7, 16 }
  0x37   : > { %1097 = vmatpush.bf16.msrb.mxu2 %v2277_v48  ;;  %1145 = vmatpush.bf16.msrb.mxu0 %v2293_v56 }
  0x38   : > { %1121 = vmatpush.bf16.msrb.mxu3 %v2285_v49 }
  0x3b   : > { %1098 = vmatpush.bf16.msrb.mxu2 %v2276_v50  ;;  %1146 = vmatpush.bf16.msrb.mxu0 %v2292_v59  ;;  %v2286_v50 = vld [vmem:[%s3201_s1 + $0x100] sm:$0xff] }
  0x3c   : > { %1122 = vmatpush.bf16.msrb.mxu3 %v2284_v51 }
  0x3d   : > { %315 = vxpose.xlu1.b32.cont [5/16] (narrow) %v1913_v8, 16  ;;  %v2278_v8 = vld [vmem:[%s3201_s1 + $0xc0] sm:$0xff] }
  0x3e   : > { %266 = vxpose.xlu0.b32.cont [5/16] (narrow) %v250_v9, 16 }
  0x3f   : > { %1099 = vmatpush.bf16.msrb.mxu2 %v2275_v52  ;;  %1147 = vmatpush.bf16.msrb.mxu0 %v2291_v63 }
  0x40   : > { %1123 = vmatpush.bf16.msrb.mxu3 %v2283_v53 }
  0x43   : > { %1100 = vmatpush.bf16.msrb.mxu2 %v2274_v54  ;;  %1148 = vmatpush.bf16.msrb.mxu0 %v2290_v5 }
  0x44   : > { %1124 = vmatpush.bf16.msrb.mxu3 %v2282_v55 }
  0x45   : > { %316 = vxpose.xlu1.b32.cont [6/16] (narrow) %v1914_v10, 16 }
  0x46   : > { %267 = vxpose.xlu0.b32.cont [6/16] (narrow) %v251_v11, 16 }
  0x47   : > { %1101 = vmatpush.bf16.msrb.mxu2 %v2273_v57 }
  0x48   : > { %1125 = vmatpush.bf16.msrb.mxu3 %v2281_v58 }
  0x4b   : > { %1102 = vmatpush.bf16.msrb.mxu2 %v2272_v60 }
  0x4c   : > { %1126 = vmatpush.bf16.msrb.mxu3 %v2280_v61 }
  0x4d   : > { %317 = vxpose.xlu1.b32.cont [7/16] (narrow) %v1915_v12, 16 }
  0x4e   : > { %268 = vxpose.xlu0.b32.cont [7/16] (narrow) %v252_v13, 16 }
  0x4f   : > { %1103 = vmatpush.bf16.msrb.mxu2 %v2271_v0 }
  0x50   : > { %1127 = vmatpush.bf16.msrb.mxu3 %v2279_v1 }
  0x53   : > { %1104 = vmatpush.bf16.msrb.mxu2 %v2270_v6 }
  0x54   : > { %1128 = vmatpush.bf16.msrb.mxu3 %v2278_v8 }
  0x55   : > { %318 = vxpose.xlu1.b32.cont [8/16] (narrow) %v1916_v14, 16  ;;  %v2289_v14 = vld [vmem:[%s3201_s1 + $0x118] sm:$0xff] }
  0x56   : > { %269 = vxpose.xlu0.b32.cont [8/16] (narrow) %v253_v15, 16  ;;  %1149 = vmatpush.bf16.msrb.mxu0 %v2289_v14 }
  0x5d   : > { %319 = vxpose.xlu1.b32.cont [9/16] (narrow) %v1917_v16, 16 }
  0x5e   : > { %270 = vxpose.xlu0.b32.cont [9/16] (narrow) %v254_v17, 16 }
  0x65   : > { %320 = vxpose.xlu1.b32.cont [10/16] (narrow) %v1918_v18, 16 }
  0x66   : > { %271 = vxpose.xlu0.b32.cont [10/16] (narrow) %v255_v19, 16  ;;  %v2288_v19 = vld [vmem:[%s3201_s1 + $0x110] sm:$0xff] }
  0x67   : > { %1150 = vmatpush.bf16.msrb.mxu0 %v2288_v19 }
  0x6b   : > { %1151 = vmatpush.bf16.msrb.mxu0 %v2287_v32 }
  0x6d   : > { %321 = vxpose.xlu1.b32.cont [11/16] (narrow) %v1919_v20, 16 }
  0x6e   : > { %272 = vxpose.xlu0.b32.cont [11/16] (narrow) %v256_v21, 16 }
  0x6f   : > { %1152 = vmatpush.bf16.msrb.mxu0 %v2286_v50 }
  0x75   : > { %322 = vxpose.xlu1.b32.cont [12/16] (narrow) %v1920_v22, 16 }
  0x76   : > { %273 = vxpose.xlu0.b32.cont [12/16] (narrow) %v257_v23, 16 }
  0x7d   : > { %323 = vxpose.xlu1.b32.cont [13/16] (narrow) %v1921_v28, 16 }
  0x7e   : > { %274 = vxpose.xlu0.b32.cont [13/16] (narrow) %v258_v29, 16 }
  0x85   : > { %324 = vxpose.xlu1.b32.cont [14/16] (narrow) %v1922_v34, 16 }
  0x86   : > { %275 = vxpose.xlu0.b32.cont [14/16] (narrow) %v259_v35, 16 }
  0x8d   : > { %325 = vxpose.xlu1.b32.cont [15/16] (narrow) %v1923_v40, 16 }
  0x8e   : > { %276 = vxpose.xlu0.b32.cont [15/16] (narrow) %v260_v41, 16 }
  0x95   : > { %326 = vxpose.xlu1.b32.end [16/16] (narrow) %v1924_v44, 16 }
  0x96   : > { %277 = vxpose.xlu0.b32.end [16/16] (narrow) %v261_v45, 16 }
  0xc1   : > { %v2740_v2 = vpop.trf.xlu1 }
  0xc2   : > { %v2742_v3 = vpop.trf.xlu0  ;;  %v2763_v11 = vmax.f32 %v2740_v2, 0.0 }
  0xc3   : > { %v2753_v7 = vmax.f32 %v2742_v3, 0.0 }
  0xc4   : > { %v566_v21 = vrot.slane %v2763_v11, 6  ;;  %v583_v27 = vrot.slane %v2763_v11, 7  ;;  %v605_v32 = vrot.slane %v2763_v11, 1  ;;  %v622_v50 = vrot.slane %v2763_v11, 2 }
  0xc5   : > { %v564_v9 = vrot.slane %v2753_v7, 6  ;;  %v581_v10 = vrot.slane %v2753_v7, 7  ;;  %v603_v57 = vrot.slane %v2753_v7, 1  ;;  %v598_v5 = vpack.c.bf16 %v2753_v7, %v2753_v7 }
  0xc6   : > { %v571_v58 = vsel %vm568_vm0, 0.0, %v566_v21  ;;  %v588_v59 = vsel %vm585_vm1, 0.0, %v583_v27 }
  0xc7   : > { %v574_v12 = vsel %vm568_vm0, 0.0, %v564_v9  ;;  %v591_v13 = vsel %vm585_vm1, 0.0, %v581_v10  ;;  %v578_v1 = vpack.c.bf16 %v571_v58, %v571_v58  ;;  %v595_v6 = vpack.c.bf16 %v588_v59, %v588_v59 }
  0xc8   : > { %v575_v20 = vpack.c.bf16 %v574_v12, %v574_v12  ;;  %v592_v22 = vpack.c.bf16 %v591_v13, %v591_v13  ;;  %v678_v19 = vunpack.c.l.b16 %v598_v5 }
  0xc9   : > { %v2772_v15 = vpop.trf.xlu1  ;;  %v646_v14 = vunpack.c.l.b16 %v578_v1 }
  0xca   : > { %v2774_v16 = vpop.trf.xlu0  ;;  %v2777_v17 = vmax.f32 %v2772_v15, 0.0  ;;  %v643_v37 = vunpack.c.l.b16 %v575_v20  ;;  %v661_v38 = vunpack.c.l.b16 %v592_v22  ;;  %v664_v20 = vunpack.c.l.b16 %v595_v6 }
  0xcb   : > { %v2780_v18 = vmax.f32 %v2774_v16, 0.0 }
  0xcc   : > { %v567_v24 = vrot.slane %v2777_v17, 6  ;;  %v584_v26 = vrot.slane %v2777_v17, 7 }
  0xcd   : > { %v565_v23 = vrot.slane %v2780_v18, 6  ;;  %v582_v25 = vrot.slane %v2780_v18, 7  ;;  %v604_v54 = vrot.slane %v2780_v18, 1  ;;  %v599_v61 = vpack.c.bf16 %v2780_v18, %v2780_v18 }
  0xce   : > { %v569_v29 = vsel %vm568_vm0, %v567_v24, 0.0  ;;  %v570_v30 = vsel %vm568_vm0, %v566_v21, %v567_v24  ;;  %v586_v39 = vsel %vm585_vm1, %v584_v26, 0.0  ;;  %v587_v40 = vsel %vm585_vm1, %v583_v27, %v584_v26 }
  0xcf   : > { %v573_v28 = vsel %vm568_vm0, %v564_v9, %v565_v23  ;;  %v590_v31 = vsel %vm585_vm1, %v581_v10, %v582_v25  ;;  %v579_v34 = vpack.c.bf16 %v570_v30, %v570_v30  ;;  %v580_v35 = vpack.c.bf16 %v569_v29, %v569_v29 }
  0xd0   : > { %v576_v33 = vpack.c.bf16 %v573_v28, %v573_v28  ;;  %v593_v36 = vpack.c.bf16 %v590_v31, %v590_v31  ;;  %v596_v45 = vpack.c.bf16 %v587_v40, %v587_v40  ;;  %v597_v46 = vpack.c.bf16 %v586_v39, %v586_v39 }
  0xd1   : > { %v647_v42 = vunpack.c.l.b16 %v579_v34  ;;  %v648_v43 = vunpack.c.l.b16 %v580_v35  ;;  %v572_v55 = vsel %vm568_vm0, %v565_v23, 0.0  ;;  %v589_v56 = vsel %vm585_vm1, %v582_v25, 0.0 }
  0xd2   : > { %v644_v41 = vunpack.c.l.b16 %v576_v33  ;;  %v662_v44 = vunpack.c.l.b16 %v593_v36  ;;  %v665_v51 = vunpack.c.l.b16 %v596_v45  ;;  %v666_v52 = vunpack.c.l.b16 %v597_v46 }
  0xd3   : > { %v651_v48 = vpack.c.b16 %v648_v43, %v647_v42  ;;  %v577_v60 = vpack.c.bf16 %v572_v55, %v572_v55  ;;  %v611_v62 = vsel %vm607_vm2, %v604_v54, 0.0  ;;  %v612_v63 = vsel %vm607_vm2, %v603_v57, %v604_v54 }
  0xd4   : > { %v649_v47 = vpack.c.b16 %v644_v41, %v643_v37  ;;  %v667_v49 = vpack.c.b16 %v662_v44, %v661_v38  ;;  %v669_v53 = vpack.c.b16 %v666_v52, %v665_v51  ;;  %v594_v0 = vpack.c.bf16 %v589_v56, %v589_v56 }
  0xd5   : > { %1067 = vmatmul.bf16.vlgmr.msra.gmra.mxu2 %v651_v48  ;;  %v614_v8 = vpack.c.bf16 %v612_v63, %v612_v63  ;;  %v615_v9 = vpack.c.bf16 %v611_v62, %v611_v62  ;;  %v645_v10 = vunpack.c.l.b16 %v577_v60  ;;  %v679_v12 = vunpack.c.l.b16 %v599_v61 }
  0xd6   : > { %1057 = vmatmul.bf16.vlgmr.msra.gmra.mxu0 %v649_v47  ;;  %1081 = vmatmul.bf16.vlgmr.msra.gmra.mxu1 %v667_v49  ;;  %v663_v13 = vunpack.c.l.b16 %v594_v0  ;;  %v621_v26 = vrot.slane %v2780_v18, 2  ;;  %v620_v28 = vrot.slane %v2753_v7, 2  ;;  %v606_v29 = vrot.slane %v2777_v17, 1 }
  0xd7   : > { %1091 = vmatmul.bf16.vlgmr.msra.gmra.mxu3 %v669_v53  ;;  %v695_v21 = vunpack.c.l.b16 %v614_v8  ;;  %v696_v22 = vunpack.c.l.b16 %v615_v9  ;;  %v650_v23 = vpack.c.b16 %v646_v14, %v645_v10  ;;  %v683_v24 = vpack.c.b16 %v679_v12, %v678_v19  ;;  %v2316_v14 = vld [vmem:[#allocation2 + $0xb0] sm:$0xff]  ;;  %v2315_v19 = vld [vmem:[#allocation2 + $0xa8] sm:$0xff] }
  0xd8   : > { %v668_v25 = vpack.c.b16 %v664_v20, %v663_v13  ;;  %v628_v30 = vsel %vm624_vm3, %v621_v26, 0.0  ;;  %v629_v31 = vsel %vm624_vm3, %v620_v28, %v621_v26  ;;  %v601_v18 = vpack.c.bf16 %v2763_v11, %v2763_v11  ;;  %v2317_v13 = vld [vmem:[#allocation2 + $0xb8] sm:$0xff] }
  0xd9   : > { %v701_v27 = vpack.c.b16 %v696_v22, %v695_v21  ;;  %v609_v33 = vsel %vm607_vm2, %v605_v32, %v606_v29  ;;  %v631_v34 = vpack.c.bf16 %v629_v31, %v629_v31  ;;  %v632_v35 = vpack.c.bf16 %v628_v30, %v628_v30  ;;  %1729 = vmatpush.bf16.msra.mxu3 %v2317_v13  ;;  %v2325_v31 = vld [vmem:[#allocation2 + $0xf8] sm:$0xff] }
  0xda   : > { %v610_v36 = vsel %vm607_vm2, 0.0, %v605_v32  ;;  %v617_v37 = vpack.c.bf16 %v609_v33, %v609_v33  ;;  %v2511_v38 = vmov 0.0|0.0   ;;  %v681_v40 = vunpack.c.l.b16 %v601_v18  ;;  %v2314_v32 = vld [vmem:[#allocation2 + $0xa0] sm:$0xff]  ;;  %1751 = vmatpush.bf16.msra.mxu0 %v2325_v31 }
  0xdb   : > { %v680_v39 = vunpack.c.l.b16 %v2511_v38  ;;  %v713_v41 = vunpack.c.l.b16 %v631_v34  ;;  %v714_v42 = vunpack.c.l.b16 %v632_v35  ;;  %v616_v43 = vpack.c.bf16 %v610_v36, %v610_v36 }
  0xdc   : > { %v698_v44 = vunpack.c.l.b16 %v617_v37  ;;  %v623_v48 = vrot.slane %v2777_v17, 2  ;;  %v627_v52 = vsel %vm624_vm3, 0.0, %v622_v50  ;;  %v602_v53 = vpack.c.bf16 %v2777_v17, %v2777_v17 }
  0xdd   : > { %v684_v45 = vpack.c.b16 %v681_v40, %v680_v39  ;;  %v719_v46 = vpack.c.b16 %v714_v42, %v713_v41  ;;  %v697_v47 = vunpack.c.l.b16 %v616_v43  ;;  %v608_v54 = vsel %vm607_vm2, %v606_v29, 0.0  ;;  %1730 = vmatpush.bf16.msra.mxu3 %v2316_v14  ;;  %v2313_v40 = vld [vmem:[#allocation2 + $0x98] sm:$0xff] }
  0xde   : > { %v626_v51 = vsel %vm624_vm3, %v622_v50, %v623_v48  ;;  %v613_v56 = vsel %vm607_vm2, 0.0, %v603_v57  ;;  %v633_v11 = vpack.c.bf16 %v627_v52, %v627_v52  ;;  %v618_v58 = vpack.c.bf16 %v608_v54, %v608_v54 }
  0xdf   : > { %v702_v49 = vpack.c.b16 %v698_v44, %v697_v47  ;;  %v634_v55 = vpack.c.bf16 %v626_v51, %v626_v51  ;;  %v682_v59 = vunpack.c.l.b16 %v602_v53  ;;  %v619_v61 = vpack.c.bf16 %v613_v56, %v613_v56 }
  0xe0   : > { %v715_v62 = vunpack.c.l.b16 %v633_v11  ;;  %v699_v63 = vunpack.c.l.b16 %v618_v58  ;;  %v625_v7 = vsel %vm624_vm3, %v623_v48, 0.0  ;;  %v630_v57 = vsel %vm624_vm3, 0.0, %v620_v28  ;;  %v2323_v11 = vld [vmem:[#allocation2 + $0xe8] sm:$0xff]  ;;  %v2312_v58 = vld [vmem:[#allocation2 + $0x90] sm:$0xff] }
  0xe1   : > { %v716_v60 = vunpack.c.l.b16 %v634_v55  ;;  %v685_v0 = vpack.c.b16 %v680_v39, %v682_v59  ;;  %v700_v5 = vunpack.c.l.b16 %v619_v61  ;;  %v635_v6 = vpack.c.bf16 %v625_v7, %v625_v7  ;;  %1731 = vmatpush.bf16.msra.mxu3 %v2315_v19  ;;  %v2324_v39 = vld [vmem:[#allocation2 + $0xf0] sm:$0xff]  ;;  %v2311_v7 = vld [vmem:[#allocation2 + $0x88] sm:$0xff] }
  0xe2   : > { %v636_v8 = vpack.c.bf16 %v630_v57, %v630_v57  ;;  %v357_v21 = vand.u32 65535, %v2744_v4  ;;  %v358_v22 = vshrl.u32 %v2744_v4, 16  ;;  %v2870_v18 = vadd.s32 8, %v2744_v4  ;;  %1752 = vmatpush.bf16.msra.mxu0 %v2324_v39 }
  0xe3   : > { %v720_v1 = vpack.c.b16 %v716_v60, %v715_v62  ;;  %v703_v17 = vpack.c.b16 %v700_v5, %v699_v63  ;;  %v717_v9 = vunpack.c.l.b16 %v635_v6  ;;  %v2512_v34 = vmov 0   ;;  %v2891_v62 = vld [vmem:[%s3202_s2] ss:$0 sm:$0xff] }
  0xe4   : > { %v718_v10 = vunpack.c.l.b16 %v636_v8  ;;  %v363_v26 = vmul.u32 43690, %v358_v22  ;;  %v386_v41 = vand.u32 65535, %v2870_v18  ;;  %v387_v43 = vshrl.u32 %v2870_v18, 16 }
  0xe5   : > { %1105 = vmatmul.bf16.vlgmr.msrb.gmra.mxu2 %v683_v24  ;;  %v361_v24 = vmul.u32 43690, %v357_v21  ;;  %1732 = vmatpush.bf16.msra.mxu3 %v2314_v32  ;;  %v2886_v61 = vadd.s32 16, %v2744_v4 }
  0xe6   : > { %1062 = vmatmul.bf16.gmra.mxu0 %v650_v23  ;;  %1086 = vmatmul.bf16.gmra.mxu1 %v668_v25  ;;  %v721_v12 = vpack.c.b16 %v718_v10, %v717_v9  ;;  %v360_v23 = vmul.u32 43691, %v357_v21  ;;  %v362_v25 = vmul.u32 43691, %v358_v22  ;;  %v390_v47 = vmul.u32 43690, %v386_v41 }
  0xe7   : > { %1129 = vmatmul.bf16.vlgmr.msrb.gmra.mxu3 %v701_v27  ;;  %v364_v27 = vshll.u32 %v361_v24, 16  ;;  %v365_v37 = vshrl.u32 %v361_v24, 16  ;;  %v392_v51 = vmul.u32 43690, %v387_v43  ;;  %1753 = vmatpush.bf16.msra.mxu0 %v2323_v11  ;;  %v415_v6 = vand.u32 65535, %v2886_v61 }
  0xe8   : > { %v366_v29 = vshll.u32 %v362_v25, 16  ;;  %v367_v44 = vshrl.u32 %v362_v25, 16  ;;  %v393_v52 = vshll.u32 %v390_v47, 16  ;;  %v416_v8 = vshrl.u32 %v2886_v61, 16 }
  0xe9   : > { %vm368_vm4 = vc.u32 %v360_v23, %v364_v27  ;;  %v370_v30 = vadd.s32 %v364_v27, %v360_v23  ;;  %1733 = vmatpush.bf16.msra.mxu3 %v2313_v40  ;;  %v418_v13 = vmul.u32 43691, %v415_v6  ;;  %v419_v14 = vmul.u32 43690, %v415_v6 }
  0xea   : > { %v369_v35 = vsel %vm368_vm4, 1, %v2512_v34  ;;  %v2898_v19 = vmul.u32 43691, %v416_v8 }
  0xeb   : > { %v371_v38 = vadd.s32 %v369_v35, %v363_v26  ;;  %vm372_vm5 = vc.u32 %v370_v30, %v366_v29  ;;  %v421_v26 = vmul.u32 43690, %v416_v8  ;;  %v422_v27 = vshll.u32 %v419_v14, 16  ;;  %v2321_v29 = vld [vmem:[#allocation2 + $0xd8] sm:$0xff]  ;;  %v2310_v30 = vld [vmem:[#allocation2 + $0x80] sm:$0xff] }
  0xec   : > { %v373_v42 = vsel %vm372_vm5, 1, %v2512_v34  ;;  %v424_v31 = vshll.u32 %v2898_v19, 16 }
  0xed   : > { %1734 = vmatpush.bf16.msra.mxu3 %v2312_v58  ;;  %vm426_vm10 = vc.u32 %v418_v13, %v422_v27  ;;  %v428_v35 = vadd.s32 %v422_v27, %v418_v13  ;;  %v2299_v27 = vld [vmem:[#allocation2 + $0x28] sm:$0xff] }
  0xee   : > { %v427_v40 = vsel %vm426_vm10, 1, %v2512_v34 }
  0xef   : > { %vm430_vm12 = vc.u32 %v428_v35, %v424_v31 }
  0xf1   : > { %1735 = vmatpush.bf16.msra.mxu3 %v2311_v7 }
  0xf5   : > { %1110 = vmatmul.bf16.gmra.mxu2 %v684_v45  ;;  %v375_v45 = vadd.s32 %v373_v42, %v371_v38  ;;  %1736 = vmatpush.bf16.msra.mxu3 %v2310_v30 }
  0xf6   : > { %1153 = vmatmul.bf16.vlgmr.msrb.gmra.mxu0 %v719_v46  ;;  %v389_v46 = vmul.u32 43691, %v386_v41  ;;  %v2320_v41 = vld [vmem:[#allocation2 + $0xd0] sm:$0xff] }
  0xf7   : > { %1134 = vmatmul.bf16.gmra.mxu3 %v702_v49  ;;  %v391_v49 = vmul.u32 43691, %v387_v43  ;;  %v376_v50 = vadd.s32 %v375_v45, %v365_v37  ;;  %v2911_v37 = vadd.s32 24, %v2744_v4  ;;  %v429_v45 = vadd.s32 %v427_v40, %v421_v26 }
  0xf8   : > { %vm397_vm6 = vc.u32 %v389_v46, %v393_v52  ;;  %v399_v56 = vadd.s32 %v393_v52, %v389_v46  ;;  %v2301_v46 = vld [vmem:[#allocation2 + $0x38] sm:$0xff] }
  0xf9   : > { %v395_v54 = vshll.u32 %v391_v49, 16  ;;  %v377_v55 = vadd.s32 %v376_v50, %v367_v44  ;;  %v398_v60 = vsel %vm397_vm6, 1, %v2512_v34  ;;  %v423_v44 = vshrl.u32 %v419_v14, 16  ;;  %1685 = vmatpush.bf16.msrb.mxu1 %v2301_v46 }
  0xfa   : > { %v400_v5 = vadd.s32 %v398_v60, %v392_v51  ;;  %v445_v50 = vshrl.u32 %v2911_v37, 16 }
  0xfb   : > { %vm401_vm7 = vc.u32 %v399_v56, %v395_v54  ;;  %v425_v54 = vshrl.u32 %v2898_v19, 16 }
  0xfc   : > { %v402_v57 = vsel %vm401_vm7, 1, %v2512_v34  ;;  %v2931_v60 = vmul.u32 43691, %v445_v50  ;;  %v450_v8 = vmul.u32 43690, %v445_v50 }
  0xfd   : > { %v404_v10 = vadd.s32 %v402_v57, %v400_v5  ;;  %v2300_v5 = vld [vmem:[#allocation2 + $0x30] sm:$0xff] }
  0xfe   : > { %1686 = vmatpush.bf16.msrb.mxu1 %v2300_v5 }
 0x102   : > { %1687 = vmatpush.bf16.msrb.mxu1 %v2299_v27  ;;  %v2333_v27 = vld [vmem:[#allocation2 + $0x138] sm:$0xff] }
 0x105   : > { %1115 = vmatmul.bf16.gmra.mxu2 %v685_v0  ;;  %v378_v0 = vshrl.u32 %v377_v55, 4  ;;  %v431_v55 = vsel %vm430_vm12, 1, %v2512_v34 }
 0x106   : > { %1158 = vmatmul.bf16.gmra.mxu0 %v720_v1  ;;  %v394_v1 = vshrl.u32 %v390_v47, 16  ;;  %v433_v56 = vadd.s32 %v431_v55, %v429_v45 }
 0x107   : > { %1139 = vmatmul.bf16.gmra.mxu3 %v703_v17  ;;  %v2322_v17 = vld [vmem:[#allocation2 + $0xe0] sm:$0xff]  ;;  %v379_v9 = vmul.u32 24, %v378_v0  ;;  %v2309_v0 = vld [vmem:[#allocation2 + $0x78] sm:$0xff] }
 0x108   : > { %v405_v23 = vadd.s32 %v404_v10, %v394_v1  ;;  %1754 = vmatpush.bf16.msra.mxu0 %v2322_v17  ;;  %v2319_v1 = vld [vmem:[#allocation2 + $0xc8] sm:$0xff]  ;;  %v434_v6 = vadd.s32 %v433_v56, %v423_v44  ;;  %1707 = vmatpush.bf16.msra.mxu2 %v2309_v0  ;;  %v2308_v10 = vld [vmem:[#allocation2 + $0x70] sm:$0xff]  ;;  %v454_v56 = vshrl.u32 %v2931_v60, 16 }
 0x109   : > { %v2903_v22 = vsub.s32 %v2744_v4, %v379_v9 }
 0x10b   : > { %vm528_vm8 = vcmp.ne.s32.totalorder %v2903_v22, 0  ;;  %vm534_vm9 = vcmp.lt.s32.totalorder %v2903_v22, 0  ;;  %v546_v42 = vadd.s32 24, %v2903_v22 }
 0x10c   : > { %1755 = vmatpush.bf16.msra.mxu0 %v2321_v29  ;;  %vm2919_vm11 = vmand %vm534_vm9, %vm528_vm8  ;;  %1708 = vmatpush.bf16.msra.mxu2 %v2308_v10 }
 0x110   : > { %1756 = vmatpush.bf16.msra.mxu0 %v2320_v41 }
 0x114   : > { %1757 = vmatpush.bf16.msra.mxu0 %v2319_v1 }
 0x116   : > { %1163 = vmatmul.bf16.gmra.mxu0 %v721_v12  ;;  %v396_v12 = vshrl.u32 %v391_v49, 16 }
 0x153   : > { %v2863_v20 = vpop.f32.mrf.mxu0  ;;  %v1082_v48 = vpop.f32.mrf.mxu1 }
 0x154   : > { %v1059_v21 = vadd.f32 %v2891_v62, %v2863_v20  ;;  %v406_v20 = vadd.s32 %v405_v23, %v396_v12  ;;  %v435_v23 = vadd.s32 %v434_v6, %v425_v54  ;;  %v2306_v54 = vld [vmem:[#allocation2 + $0x60] sm:$0xff] }
 0x156   : > { %v1083_v38 = vadd.f32 %v1082_v48, %v1059_v21  ;;  %v407_v43 = vshrl.u32 %v406_v20, 4  ;;  %v444_v48 = vand.u32 65535, %v2911_v37  ;;  %v453_v21 = vshll.u32 %v2931_v60, 16 }
 0x157   : > { %v436_v31 = vshrl.u32 %v435_v23, 4 }
 0x158   : > { %v2867_v28 = vpop.f32.mrf.mxu2  ;;  %v408_v52 = vmul.u32 24, %v407_v43  ;;  %v447_v11 = vmul.u32 43691, %v444_v48  ;;  %v2929_v58 = vmul.u32 43690, %v444_v48  ;;  %v2298_v43 = vld [vmem:[#allocation2 + $0x20] sm:$0xff] }
 0x159   : > { %v437_v40 = vmul.u32 24, %v436_v31  ;;  %v2963_v44 = vadd.f32 %v2891_v62, %v2867_v28  ;;  %1688 = vmatpush.bf16.msrb.mxu1 %v2298_v43  ;;  %v2296_v43 = vld [vmem:[#allocation2 + $0x10] sm:$0xff] }
 0x15a   : > { %v2875_v36 = vpop.f32.mrf.mxu3  ;;  %v2937_v7 = vsub.s32 %v2870_v18, %v408_v52  ;;  %v451_v9 = vshll.u32 %v2929_v58, 16  ;;  %v452_v49 = vshrl.u32 %v2929_v58, 16  ;;  %v2297_v58 = vld [vmem:[#allocation2 + $0x18] sm:$0xff] }
 0x15b   : > { %v2872_v33 = vpop.f32.mrf.mxu0  ;;  %v1084_v24 = vpop.f32.mrf.mxu1 }
 0x15c   : > { %v1061_v51 = vadd.f32 %v2891_v62, %v2872_v33  ;;  %v552_v33 = vsel %vm2919_vm11, %v546_v42, %v2903_v22  ;;  %vm529_vm13 = vcmp.ne.s32.totalorder %v2937_v7, 0  ;;  %vm535_vm14 = vcmp.lt.s32.totalorder %v2937_v7, 0  ;;  %v2307_v42 = vld [vmem:[#allocation2 + $0x68] sm:$0xff] }
 0x15d   : > { %vm455_vm15 = vc.u32 %v447_v11, %v451_v9  ;;  %vm558_vm4 = vcmp.lt.s32.totalorder %v552_v33, 16  ;;  %v547_v30 = vadd.s32 24, %v2937_v7  ;;  %vm2951_vm5 = vmand %vm535_vm14, %vm529_vm13  ;;  %1709 = vmatpush.bf16.msra.mxu2 %v2307_v42  ;;  %1689 = vmatpush.bf16.msrb.mxu1 %v2297_v58  ;;  %v2305_v42 = vld [vmem:[#allocation2 + $0x58] sm:$0xff]  ;;  %v1093_v33 = vadd.f32 %v2875_v36, %v2963_v44 }
 0x15e   : > { %v1085_v12 = vadd.f32 %v1084_v24, %v1061_v51  ;;  %v456_v24 = vsel %vm455_vm15, 1, %v2512_v34  ;;  %v438_v51 = vsub.s32 %v2886_v61, %v437_v40 }
 0x15f   : > { %v458_v20 = vadd.s32 %v456_v24, %v450_v8  ;;  %v553_v50 = vsel %vm2951_vm5, %v547_v30, %v2937_v7 }
 0x160   : > { %v2880_v53 = vpop.f32.mrf.mxu2  ;;  %vm530_vm7 = vcmp.ne.s32.totalorder %v438_v51, 0  ;;  %vm536_vm8 = vcmp.lt.s32.totalorder %v438_v51, 0  ;;  %v548_v61 = vadd.s32 24, %v438_v51  ;;  %vm559_vm9 = vcmp.lt.s32.totalorder %v553_v50, 16 }
 0x161   : > { %vm2977_vm10 = vmand %vm536_vm8, %vm530_vm7  ;;  %1710 = vmatpush.bf16.msra.mxu2 %v2306_v54  ;;  %1690 = vmatpush.bf16.msrb.mxu1 %v2296_v43  ;;  %v2304_v54 = vld [vmem:[#allocation2 + $0x50] sm:$0xff] }
 0x162   : > { %v2893_v63 = vpop.f32.mrf.mxu3  ;;  %v554_v10 = vsel %vm2977_vm10, %v548_v61, %v438_v51 }
 0x163   : > { %v2882_v59 = vpop.f32.mrf.mxu0  ;;  %v1087_v14 = vpop.f32.mrf.mxu1  ;;  %vm2995_vm11 = vcmp.lt.s32.totalorder %v554_v10, 16  ;;  %v1071_v10 = vadd.f32 %v2891_v62, %v2880_v53 }
 0x164   : > { %v1064_v13 = vadd.f32 %v2891_v62, %v2882_v59  ;;  %v457_v59 = vadd.s32 %v451_v9, %v447_v11 }
 0x165   : > { %1711 = vmatpush.bf16.msra.mxu2 %v2305_v42 }
 0x166   : > { %vm459_vm6 = vc.u32 %v457_v59, %v453_v21  ;;  %v1088_v45 = vadd.f32 %v1087_v14, %v1064_v13  ;;  %v2986_v14 = vadd.s32 40, %v2744_v4 }
 0x167   : > { %v460_v41 = vsel %vm459_vm6, 1, %v2512_v34 }
 0x168   : > { %v1106_v25 = vpop.f32.mrf.mxu2  ;;  %v462_v52 = vadd.s32 %v460_v41, %v458_v20  ;;  %v502_v41 = vand.u32 65535, %v2986_v14 }
 0x169   : > { %v1107_v47 = vadd.f32 %v1106_v25, %v1083_v38  ;;  %v2318_v25 = vld [vmem:[#allocation2 + $0xc0] sm:$0xff]  ;;  %v2956_v38 = vadd.s32 32, %v2744_v4  ;;  %1712 = vmatpush.bf16.msra.mxu2 %v2304_v54 }
 0x16a   : > { %v1130_v39 = vpop.f32.mrf.mxu3  ;;  %1758 = vmatpush.bf16.msra.mxu0 %v2318_v25  ;;  %v463_v7 = vadd.s32 %v462_v52, %v452_v49  ;;  %v503_v52 = vshrl.u32 %v2986_v14, 16 }
 0x16b   : > { %v2908_v32 = vpop.f32.mrf.mxu0  ;;  %v1131_v57 = vadd.f32 %v1130_v39, %v1107_v47  ;;  %v474_v11 = vshrl.u32 %v2956_v38, 16  ;;  %v1089_v5 = vpop.f32.mrf.mxu1 }
 0x16c   : > { %v1066_v46 = vadd.f32 %v2891_v62, %v2908_v32  ;;  %v473_v32 = vand.u32 65535, %v2956_v38  ;;  %v3011_v61 = vmul.u32 43691, %v503_v52 }
 0x16d   : > { %v2981_v9 = vmul.u32 43691, %v474_v11 }
 0x16e   : > { %v477_v60 = vmul.u32 43690, %v473_v32  ;;  %v476_v8 = vmul.u32 43691, %v473_v32  ;;  %v511_v62 = vshll.u32 %v3011_v61, 16 }
 0x16f   : > { %v482_v59 = vshll.u32 %v2981_v9, 16  ;;  %v483_v51 = vshrl.u32 %v2981_v9, 16  ;;  %v2294_v9 = vld [vmem:[#allocation2] sm:$0xff] }
 0x170   : > { %v1108_v17 = vpop.f32.mrf.mxu2  ;;  %v480_v13 = vshll.u32 %v477_v60, 16  ;;  %v481_v30 = vshrl.u32 %v477_v60, 16 }
 0x171   : > { %v1109_v26 = vadd.f32 %v1108_v17, %v1085_v12  ;;  %v464_v12 = vadd.s32 %v463_v7, %v454_v56 }
 0x172   : > { %v1132_v18 = vpop.f32.mrf.mxu3  ;;  %vm484_vm12 = vc.u32 %v476_v8, %v480_v13  ;;  %v486_v40 = vadd.s32 %v480_v13, %v476_v8  ;;  %v2303_v8 = vld [vmem:[#allocation2 + $0x48] sm:$0xff] }
 0x173   : > { %v1154_v19 = vpop.f32.mrf.mxu0  ;;  %v1133_v48 = vadd.f32 %v1132_v18, %v1109_v26  ;;  %v485_v35 = vsel %vm484_vm12, 1, %v2512_v34  ;;  %1713 = vmatpush.bf16.msra.mxu2 %v2303_v8 }
 0x174   : > { %v1155_v22 = vadd.f32 %v1154_v19, %v1131_v57  ;;  %v1090_v57 = vadd.f32 %v1089_v5, %v1066_v46  ;;  %vm488_vm13 = vc.u32 %v486_v40, %v482_v59 }
 0x176   : > { %v1169_v29 = vmax.f32 %v1155_v22, 0.0  ;;  %v479_v22 = vmul.u32 43690, %v474_v11  ;;  %v489_v11 = vsel %vm488_vm13, 1, %v2512_v34 }
 0x178   : > { %v2958_v39 = vsel %vm558_vm4, %v1169_v29, 0.0  ;;  %v1111_v47 = vpop.f32.mrf.mxu2  ;;  %v465_v29 = vshrl.u32 %v464_v12, 4  ;;  %v487_v49 = vadd.s32 %v485_v35, %v479_v22 }
 0x179   : > { %v1229_v28 = vpack.c.bf16 %v2958_v39, %v2958_v39  ;;  %v1112_v17 = vadd.f32 %v1111_v47, %v1088_v45  ;;  %v1235_v19 = vrot.slane %v2958_v39, 1 }
 0x17a   : > { %v1135_v0 = vpop.f32.mrf.mxu3  ;;  %v466_v46 = vmul.u32 24, %v465_v29 }
 0x17b   : > { %v1156_v55 = vpop.f32.mrf.mxu0  ;;  %v1313_v18 = vunpack.c.l.b16 %v1229_v28  ;;  %v1136_v23 = vadd.f32 %v1135_v0, %v1112_v17  ;;  %v2295_v28 = vld [vmem:[#allocation2 + $0x8] sm:$0xff]  ;;  %v491_v0 = vadd.s32 %v489_v11, %v487_v49 }
 0x17c   : > { %v1157_v1 = vadd.f32 %v1156_v55, %v1133_v48  ;;  %v467_v32 = vsub.s32 %v2911_v37, %v466_v46  ;;  %1691 = vmatpush.bf16.msrb.mxu1 %v2295_v28 }
 0x17e   : > { %v1170_v6 = vmax.f32 %v1157_v1, 0.0  ;;  %v3009_v1 = vmul.u32 43690, %v502_v41  ;;  %vm531_vm14 = vcmp.ne.s32.totalorder %v467_v32, 0  ;;  %vm537_vm15 = vcmp.lt.s32.totalorder %v467_v32, 0 }
 0x17f   : > { %v549_v17 = vadd.s32 24, %v467_v32  ;;  %vm3020_vm4 = vmand %vm537_vm15, %vm531_vm14 }
 0x180   : > { %v2989_v21 = vsel %vm559_vm9, %v1170_v6, 0.0  ;;  %v1113_v24 = vpop.f32.mrf.mxu2  ;;  %v505_v6 = vmul.u32 43691, %v502_v41  ;;  %v509_v44 = vshll.u32 %v3009_v1, 16  ;;  %1692 = vmatpush.bf16.msrb.mxu1 %v2294_v9  ;;  %v2332_v41 = vld [vmem:[#allocation2 + $0x130] sm:$0xff]  ;;  %v510_v49 = vshrl.u32 %v3009_v1, 16 }
 0x181   : > { %v1230_v25 = vpack.c.bf16 %v2989_v21, %v2989_v21  ;;  %v1236_v26 = vrot.slane %v2989_v21, 1  ;;  %v1114_v55 = vadd.f32 %v1113_v24, %v1090_v57  ;;  %v492_v57 = vadd.s32 %v491_v0, %v481_v30 }
 0x182   : > { %v1137_v48 = vpop.f32.mrf.mxu3  ;;  %v555_v36 = vsel %vm3020_vm4, %v549_v17, %v467_v32  ;;  %vm513_vm6 = vc.u32 %v505_v6, %v509_v44  ;;  %v515_v40 = vadd.s32 %v509_v44, %v505_v6 }
 0x183   : > { %v1159_v31 = vpop.f32.mrf.mxu0  ;;  %v1314_v20 = vunpack.c.l.b16 %v1230_v25  ;;  %v1245_v47 = vsel %vm607_vm2, %v1235_v19, %v1236_v26  ;;  %v1138_v12 = vadd.f32 %v1137_v48, %v1114_v55  ;;  %v508_v25 = vmul.u32 43690, %v503_v52 }
 0x184   : > { %v1160_v45 = vadd.f32 %v1159_v31, %v1136_v23  ;;  %v1247_v58 = vpack.c.bf16 %v1245_v47, %v1245_v47  ;;  %v493_v23 = vadd.s32 %v492_v57, %v483_v51  ;;  %vm561_vm5 = vcmp.lt.s32.totalorder %v555_v36, 16  ;;  %v2302_v31 = vld [vmem:[#allocation2 + $0x40] sm:$0xff]  ;;  %1773 = vmatpush.bf16.msra.mxu1 %v2333_v27 }
 0x185   : > { %v1319_v50 = vpack.c.b16 %v1314_v20, %v1313_v18  ;;  %v514_v35 = vsel %vm513_vm6, 1, %v2512_v34  ;;  %vm517_vm7 = vc.u32 %v515_v40, %v511_v62  ;;  %v1095_v48 = vadd.f32 %v2893_v63, %v1071_v10  ;;  %1714 = vmatpush.bf16.msra.mxu2 %v2302_v31 }
 0x186   : > { %v1171_v56 = vmax.f32 %v1160_v45, 0.0  ;;  %v1331_v22 = vunpack.c.l.b16 %v1247_v58  ;;  %v494_v30 = vshrl.u32 %v493_v23, 4  ;;  %v516_v45 = vadd.s32 %v514_v35, %v508_v25 }
 0x187   : > { %1737 = vmatmul.bf16.vlgmr.msra.gmra.mxu3 %v1319_v50  ;;  %v518_v52 = vsel %vm517_vm7, 1, %v2512_v34  ;;  %v512_v55 = vshrl.u32 %v3011_v61, 16  ;;  %v1253_v62 = vrot.slane %v2958_v39, 2  ;;  %v1194_v27 = vrot.slane %v2989_v21, 6 }
 0x188   : > { %v3015_v5 = vsel %vm2995_vm11, %v1171_v56, 0.0  ;;  %v1116_v7 = vpop.f32.mrf.mxu2  ;;  %v495_v43 = vmul.u32 24, %v494_v30  ;;  %v520_v56 = vadd.s32 %v518_v52, %v516_v45  ;;  %1774 = vmatpush.bf16.msra.mxu1 %v2332_v41  ;;  %v1211_v35 = vrot.slane %v2958_v39, 7 }
 0x189   : > { %v1237_v37 = vrot.slane %v3015_v5, 1  ;;  %v1231_v53 = vpack.c.bf16 %v3015_v5, %v3015_v5  ;;  %v1117_v29 = vadd.f32 %v1116_v7, %v1093_v33  ;;  %v1255_v0 = vrot.slane %v3015_v5, 2 }
 0x18a   : > { %v1140_v42 = vpop.f32.mrf.mxu3  ;;  %v496_v50 = vsub.s32 %v2956_v38, %v495_v43  ;;  %v2331_v38 = vld [vmem:[#allocation2 + $0x128] sm:$0xff]  ;;  %v521_v34 = vadd.s32 %v520_v56, %v510_v49  ;;  %v1254_v33 = vrot.slane %v2989_v21, 2 }
 0x18b   : > { %v1161_v13 = vpop.f32.mrf.mxu0  ;;  %v1244_v18 = vsel %vm607_vm2, %v1236_v26, %v1237_v37  ;;  %v1141_v54 = vadd.f32 %v1140_v42, %v1117_v29  ;;  %v1315_v28 = vunpack.c.l.b16 %v1231_v53  ;;  %v1212_v29 = vrot.slane %v2989_v21, 7 }
 0x18c   : > { %v1162_v24 = vadd.f32 %v1161_v13, %v1138_v12  ;;  %v1248_v59 = vpack.c.bf16 %v1244_v18, %v1244_v18  ;;  %vm532_vm8 = vcmp.ne.s32.totalorder %v496_v50, 0  ;;  %vm538_vm9 = vcmp.lt.s32.totalorder %v496_v50, 0  ;;  %1775 = vmatpush.bf16.msra.mxu1 %v2331_v38 }
 0x18d   : > { %v550_v11 = vadd.s32 24, %v496_v50  ;;  %vm544_vm10 = vmand %vm538_vm9, %vm532_vm8  ;;  %v522_v6 = vadd.s32 %v521_v34, %v512_v55  ;;  %v1262_v12 = vsel %vm624_vm3, %v1254_v33, %v1255_v0  ;;  %v1263_v43 = vsel %vm624_vm3, %v1253_v62, %v1254_v33 }
 0x18e   : > { %v1172_v20 = vmax.f32 %v1162_v24, 0.0  ;;  %v1332_v26 = vunpack.c.l.b16 %v1248_v59  ;;  %v1221_v49 = vsel %vm585_vm1, %v1211_v35, %v1212_v29  ;;  %v1266_v52 = vpack.c.bf16 %v1262_v12, %v1262_v12 }
 0x18f   : > { %v556_v7 = vsel %vm544_vm10, %v550_v11, %v496_v50  ;;  %v523_v9 = vshrl.u32 %v522_v6, 4  ;;  %v2328_v50 = vld [vmem:[#allocation2 + $0x110] sm:$0xff] }
 0x190   : > { %v3037_v46 = vsel %vm561_vm5, %v1172_v20, 0.0  ;;  %v1337_v47 = vpack.c.b16 %v1332_v26, %v1331_v22  ;;  %v1118_v32 = vpop.f32.mrf.mxu2  ;;  %vm562_vm11 = vcmp.lt.s32.totalorder %v556_v7, 16  ;;  %v2329_v20 = vld [vmem:[#allocation2 + $0x118] sm:$0xff]  ;;  %v1193_v26 = vrot.slane %v2958_v39, 6 }
 0x191   : > { %v1232_v51 = vpack.c.bf16 %v3037_v46, %v3037_v46  ;;  %v1238_v17 = vrot.slane %v3037_v46, 1  ;;  %v1119_v60 = vadd.f32 %v1118_v32, %v1095_v48  ;;  %v524_v18 = vmul.u32 24, %v523_v9 }
 0x192   : > { %1759 = vmatmul.bf16.vlgmr.msra.gmra.mxu0 %v1337_v47  ;;  %v1142_v36 = vpop.f32.mrf.mxu3  ;;  %v1203_v47 = vsel %vm568_vm0, %v1193_v26, %v1194_v27 }
 0x193   : > { %v1164_v63 = vpop.f32.mrf.mxu0  ;;  %v1316_v58 = vunpack.c.l.b16 %v1232_v51  ;;  %v1243_v10 = vsel %vm607_vm2, %v1237_v37, %v1238_v17  ;;  %v1143_v13 = vadd.f32 %v1142_v36, %v1119_v60  ;;  %v525_v24 = vsub.s32 %v2986_v14, %v524_v18  ;;  %v2330_v37 = vld [vmem:[#allocation2 + $0x120] sm:$0xff] }
 0x194   : > { %v1165_v1 = vadd.f32 %v1164_v63, %v1141_v54  ;;  %v1249_v25 = vpack.c.bf16 %v1243_v10, %v1243_v10  ;;  %1776 = vmatpush.bf16.msra.mxu1 %v2330_v37  ;;  %v1265_v51 = vpack.c.bf16 %v1263_v43, %v1263_v43  ;;  %v1206_v11 = vpack.c.bf16 %v1203_v47, %v1203_v47 }
 0x195   : > { %v1320_v61 = vpack.c.b16 %v1316_v58, %v1315_v28  ;;  %vm533_vm12 = vcmp.ne.s32.totalorder %v525_v24, 0  ;;  %vm539_vm13 = vcmp.lt.s32.totalorder %v525_v24, 0  ;;  %v551_v30 = vadd.s32 24, %v525_v24 }
 0x196   : > { %v1173_v57 = vmax.f32 %v1165_v1, 0.0  ;;  %vm545_vm14 = vmand %vm539_vm13, %vm533_vm12  ;;  %v1333_v14 = vunpack.c.l.b16 %v1249_v25  ;;  %v1224_v63 = vpack.c.bf16 %v1221_v49, %v1221_v49  ;;  %v3089_v58 = vunpack.c.l.b16 %v1266_v52 }
 0x197   : > { %1742 = vmatmul.bf16.gmra.mxu3 %v1320_v61  ;;  %v557_v41 = vsel %vm545_vm14, %v551_v30, %v525_v24  ;;  %v3106_v6 = vunpack.c.l.b16 %v1265_v51  ;;  %v1278_v10 = vunpack.c.l.b16 %v1206_v11  ;;  %v1196_v24 = vrot.slane %v3037_v46, 6 }
 0x198   : > { %v3049_v8 = vsel %vm562_vm11, %v1173_v57, 0.0  ;;  %vm563_vm15 = vcmp.lt.s32.totalorder %v557_v41, 16  ;;  %1777 = vmatpush.bf16.msra.mxu1 %v2329_v20  ;;  %v1296_v36 = vunpack.c.l.b16 %v1224_v63  ;;  %v1195_v30 = vrot.slane %v3015_v5, 6 }
 0x199   : > { %v1239_v44 = vrot.slane %v3049_v8, 1  ;;  %v1233_v42 = vpack.c.bf16 %v3049_v8, %v3049_v8  ;;  %v1197_v21 = vrot.slane %v3049_v8, 6 }
 0x19b   : > { %v1166_v22 = vpop.f32.mrf.mxu0  ;;  %v1242_v23 = vsel %vm607_vm2, %v1238_v17, %v1239_v44  ;;  %v1317_v32 = vunpack.c.l.b16 %v1233_v42  ;;  %v1256_v17 = vrot.slane %v3037_v46, 2 }
 0x19c   : > { %v1167_v59 = vadd.f32 %v1166_v22, %v1143_v13  ;;  %v1250_v53 = vpack.c.bf16 %v1242_v23, %v1242_v23  ;;  %1778 = vmatpush.bf16.msra.mxu1 %v2328_v50  ;;  %v1355_v22 = vpack.c.b16 %v3089_v58, %v3106_v6  ;;  %v1202_v50 = vsel %vm568_vm0, %v1194_v27, %v1195_v30 }
 0x19d   : > { %v1207_v63 = vpack.c.bf16 %v1202_v50, %v1202_v50 }
 0x19e   : > { %v1174_v31 = vmax.f32 %v1167_v59, 0.0  ;;  %v1334_v40 = vunpack.c.l.b16 %v1250_v53  ;;  %v1214_v59 = vrot.slane %v3037_v46, 7 }
 0x1a0   : > { %v1338_v45 = vpack.c.b16 %v1334_v40, %v1333_v14  ;;  %v3082_v48 = vsel %vm563_vm15, %v1174_v31, 0.0  ;;  %v2327_v31 = vld [vmem:[#allocation2 + $0x108] sm:$0xff]  ;;  %v2326_v40 = vld [vmem:[#allocation2 + $0x100] sm:$0xff] }
 0x1a1   : > { %v1198_v54 = vrot.slane %v3082_v48, 6  ;;  %v1216_v28 = vrot.slane %v3082_v48, 7  ;;  %v1234_v55 = vpack.c.bf16 %v3082_v48, %v3082_v48  ;;  %v1240_v56 = vrot.slane %v3082_v48, 1  ;;  %1779 = vmatpush.bf16.msra.mxu1 %v2327_v31  ;;  %v2409_v31 = vld [vmem:[%s3204_s4] ss:$0 sm:$0xff] }
 0x1a2   : > { %1764 = vmatmul.bf16.gmra.mxu0 %v1338_v45  ;;  %v1201_v45 = vsel %vm568_vm0, %v1195_v30, %v1196_v24 }
 0x1a3   : > { %v1318_v38 = vunpack.c.l.b16 %v1234_v55  ;;  %v1204_v1 = vsel %vm568_vm0, %v1198_v54, %v1193_v26  ;;  %v1222_v34 = vsel %vm585_vm1, %v1216_v28, %v1211_v35  ;;  %v1241_v61 = vsel %vm607_vm2, %v1239_v44, %v1240_v56 }
 0x1a4   : > { %v1205_v33 = vpack.c.bf16 %v1204_v1, %v1204_v1  ;;  %v1223_v7 = vpack.c.bf16 %v1222_v34, %v1222_v34  ;;  %v1246_v60 = vsel %vm607_vm2, %v1240_v56, %v1235_v19  ;;  %v1251_v13 = vpack.c.bf16 %v1241_v61, %v1241_v61 }
 0x1a5   : > { %v1321_v57 = vpack.c.b16 %v1318_v38, %v1317_v32  ;;  %v1252_v18 = vpack.c.bf16 %v1246_v60, %v1246_v60  ;;  %v1257_v44 = vrot.slane %v3049_v8, 2  ;;  %v1261_v19 = vsel %vm624_vm3, %v1255_v0, %v1256_v17  ;;  %1780 = vmatpush.bf16.msra.mxu1 %v2326_v40 }
 0x1a6   : > { %v1277_v9 = vunpack.c.l.b16 %v1205_v33  ;;  %v1295_v12 = vunpack.c.l.b16 %v1223_v7  ;;  %v1267_v37 = vpack.c.bf16 %v1261_v19, %v1261_v19  ;;  %v1258_v26 = vrot.slane %v3082_v48, 2 }
 0x1a7   : > { %1746 = vmatmul.bf16.gmra.mxu3 %v1321_v57  ;;  %v1260_v53 = vsel %vm624_vm3, %v1256_v17, %v1257_v44  ;;  %v1335_v35 = vunpack.c.l.b16 %v1251_v13  ;;  %v1336_v14 = vunpack.c.l.b16 %v1252_v18  ;;  %v1213_v0 = vrot.slane %v3015_v5, 7 }
 0x1a8   : > { %v1283_v23 = vpack.c.b16 %v1278_v10, %v1277_v9  ;;  %v1301_v25 = vpack.c.b16 %v1296_v36, %v1295_v12  ;;  %v1268_v20 = vpack.c.bf16 %v1260_v53, %v1260_v53  ;;  %v1351_v41 = vunpack.c.l.b16 %v1267_v37 }
 0x1a9   : > { %v1259_v42 = vsel %vm624_vm3, %v1257_v44, %v1258_v26  ;;  %v1264_v43 = vsel %vm624_vm3, %v1258_v26, %v1253_v62  ;;  %v1219_v47 = vsel %vm585_vm1, %v1213_v0, %v1214_v59  ;;  %v1339_v52 = vpack.c.b16 %v1336_v14, %v1335_v35 }
 0x1aa   : > { %1693 = vmatmul.bf16.vlgmr.msrb.gmra.mxu1 %v1283_v23  ;;  %1715 = vmatmul.bf16.vlgmr.msra.gmra.mxu2 %v1301_v25  ;;  %v1352_v46 = vunpack.c.l.b16 %v1268_v20  ;;  %v1269_v49 = vpack.c.bf16 %v1259_v42, %v1259_v42  ;;  %v1270_v5 = vpack.c.bf16 %v1264_v43, %v1264_v43  ;;  %v1220_v39 = vsel %vm585_vm1, %v1212_v29, %v1213_v0 }
 0x1ab   : > { %v1208_v56 = vpack.c.bf16 %v1201_v45, %v1201_v45  ;;  %v1226_v32 = vpack.c.bf16 %v1219_v47, %v1219_v47  ;;  %v1225_v38 = vpack.c.bf16 %v1220_v39, %v1220_v39  ;;  %v1279_v17 = vunpack.c.l.b16 %v1207_v63 }
 0x1ac   : > { %v1356_v51 = vpack.c.b16 %v1352_v46, %v1351_v41  ;;  %v1353_v62 = vunpack.c.l.b16 %v1269_v49  ;;  %v1354_v55 = vunpack.c.l.b16 %v1270_v5  ;;  %v1215_v29 = vrot.slane %v3049_v8, 7 }
 0x1ad   : > { %v1280_v1 = vunpack.c.l.b16 %v1208_v56  ;;  %v1298_v34 = vunpack.c.l.b16 %v1226_v32  ;;  %v1297_v27 = vunpack.c.l.b16 %v1225_v38  ;;  %v1199_v61 = vsel %vm568_vm0, %v1197_v21, %v1198_v54 }
 0x1ae   : > { %v1357_v11 = vpack.c.b16 %v1354_v55, %v1353_v62  ;;  %v1217_v60 = vsel %vm585_vm1, %v1215_v29, %v1216_v28  ;;  %v1200_v57 = vsel %vm568_vm0, %v1196_v24, %v1197_v21  ;;  %v1218_v9 = vsel %vm585_vm1, %v1214_v59, %v1215_v29 }
 0x1af   : > { %v1284_v33 = vpack.c.b16 %v1280_v1, %v1279_v17  ;;  %v1302_v7 = vpack.c.b16 %v1298_v34, %v1297_v27  ;;  %v1210_v10 = vpack.c.bf16 %v1199_v61, %v1199_v61  ;;  %v1228_v12 = vpack.c.bf16 %v1217_v60, %v1217_v60 }
 0x1b0   : > { %v1209_v36 = vpack.c.bf16 %v1200_v57, %v1200_v57  ;;  %v1227_v8 = vpack.c.bf16 %v1218_v9, %v1218_v9 }
 0x1b1   : > { %v1282_v13 = vunpack.c.l.b16 %v1210_v10  ;;  %v1300_v18 = vunpack.c.l.b16 %v1228_v12 }
 0x1b2   : > { %1768 = vmatmul.bf16.gmra.mxu0 %v1339_v52  ;;  %v1281_v44 = vunpack.c.l.b16 %v1209_v36  ;;  %v1299_v23 = vunpack.c.l.b16 %v1227_v8 }
 0x1b4   : > { %v1285_v54 = vpack.c.b16 %v1282_v13, %v1281_v44  ;;  %v1303_v25 = vpack.c.b16 %v1300_v18, %v1299_v23 }
 0x1ba   : > { %1698 = vmatmul.bf16.gmra.mxu1 %v1284_v33  ;;  %1720 = vmatmul.bf16.gmra.mxu2 %v1302_v7 }
 0x1ca   : > { %1702 = vmatmul.bf16.gmra.mxu1 %v1285_v54  ;;  %1724 = vmatmul.bf16.gmra.mxu2 %v1303_v25 }
 0x1da   : > { %1781 = vmatmul.bf16.vlgmr.msra.gmra.mxu1 %v1355_v22 }
 0x1ea   : > { %1786 = vmatmul.bf16.gmra.mxu1 %v1356_v51 }
 0x1fa   : > { %1790 = vmatmul.bf16.gmra.mxu1 %v1357_v11 }
 0x20a   : > { %v1738_v4 = vpop.f32.mrf.mxu3 }
 0x20f   : > { %v1760_v48 = vpop.f32.mrf.mxu0 }
 0x212   : > { %v1740_v28 = vpop.f32.mrf.mxu3 }
 0x217   : > { %v1762_v19 = vpop.f32.mrf.mxu0 }
 0x21a   : > { %v1743_v24 = vpop.f32.mrf.mxu3 }
 0x21f   : > { %v1765_v59 = vpop.f32.mrf.mxu0 }
 0x222   : > { %v1744_v53 = vpop.f32.mrf.mxu3 }
 0x227   : > { %v1766_v37 = vpop.f32.mrf.mxu0  ;;  %v1694_v30 = vpop.f32.mrf.mxu1 }
 0x228   : > { %v1695_v26 = vadd.f32 %v2409_v31, %v1694_v30 }
 0x22a   : > { %v1747_v20 = vpop.f32.mrf.mxu3 }
 0x22d   : > { %v1716_v35 = vpop.f32.mrf.mxu2 }
 0x22e   : > { %v1717_v58 = vadd.f32 %v1716_v35, %v1695_v26 }
 0x22f   : > { %v1769_v6 = vpop.f32.mrf.mxu0  ;;  %v1696_v22 = vpop.f32.mrf.mxu1 }
 0x230   : > { %v1739_v14 = vadd.f32 %v1738_v4, %v1717_v58  ;;  %v1697_v41 = vadd.f32 %v2409_v31, %v1696_v22 }
 0x232   : > { %v1749_v0 = vpop.f32.mrf.mxu3  ;;  %v1761_v40 = vadd.f32 %v1760_v48, %v1739_v14 }
 0x235   : > { %v1718_v46 = vpop.f32.mrf.mxu2 }
 0x236   : > { %v1719_v42 = vadd.f32 %v1718_v46, %v1697_v41 }
 0x237   : > { %v1771_v43 = vpop.f32.mrf.mxu0  ;;  %v1699_v45 = vpop.f32.mrf.mxu1 }
 0x238   : > { %v1741_v47 = vadd.f32 %v1740_v28, %v1719_v42 }
 0x23a   : > { %v1763_v49 = vadd.f32 %v1762_v19, %v1741_v47 }
 0x23d   : > { %v1721_v5 = vpop.f32.mrf.mxu2 }
 0x23f   : > { %v1700_v50 = vpop.f32.mrf.mxu1 }
 0x240   : > { %v1701_v51 = vadd.f32 %v2409_v31, %v1700_v50 }
 0x245   : > { %v1722_v52 = vpop.f32.mrf.mxu2 }
 0x246   : > { %v1723_v39 = vadd.f32 %v1722_v52, %v1701_v51 }
 0x247   : > { %v1703_v62 = vpop.f32.mrf.mxu1 }
 0x248   : > { %v1745_v55 = vadd.f32 %v1744_v53, %v1723_v39  ;;  %v1704_v32 = vadd.f32 %v2409_v31, %v1703_v62 }
 0x24a   : > { %v1767_v56 = vadd.f32 %v1766_v37, %v1745_v55 }
 0x24d   : > { %v1725_v11 = vpop.f32.mrf.mxu2 }
 0x24e   : > { %v1726_v63 = vadd.f32 %v1725_v11, %v1704_v32 }
 0x24f   : > { %v1705_v38 = vpop.f32.mrf.mxu1 }
 0x250   : > { %v1748_v1 = vadd.f32 %v1747_v20, %v1726_v63 }
 0x252   : > { %v1770_v34 = vadd.f32 %v1769_v6, %v1748_v1 }
 0x255   : > { %v1727_v17 = vpop.f32.mrf.mxu2 }
 0x257   : > { %v1782_v27 = vpop.f32.mrf.mxu1 }
 0x258   : > { %v1783_v33 = vadd.f32 %v1782_v27, %v1761_v40 }
 0x25a   : > { %v1795_v7 = vmul.f32 0.3, %v1783_v33 }
 0x25c   : > { %v1797_v21 = vadd.f32 %v1795_v7, %v2742_v3 }
 0x25e   : > { %1799 = vst [vmem:[%s237_s8] sm:$0xff] %v1797_v21 }
 0x25f   : > { %v1784_v29 = vpop.f32.mrf.mxu1 }
 0x260   : > { %v1785_v61 = vadd.f32 %v1784_v29, %v1763_v49 }
 0x262   : > { %v1796_v60 = vmul.f32 0.3, %v1785_v61 }
 0x264   : > { %v1798_v57 = vadd.f32 %v1796_v60, %v2774_v16 }
 0x266   : > { %1800 = vst [vmem:[%s237_s8 + $0x8] sm:$0xff] %v1798_v57 }
 0x267   : > { %v1787_v9 = vpop.f32.mrf.mxu1 }
 0x26f   : > { %v1788_v10 = vpop.f32.mrf.mxu1 }
 0x270   : > { %v1789_v12 = vadd.f32 %v1788_v10, %v1767_v56 }
 0x272   : > { %v1801_v36 = vmul.f32 0.3, %v1789_v12 }
 0x274   : > { %v1803_v8 = vadd.f32 %v1801_v36, %v2740_v2 }
 0x276   : > { %2245 = vst [vmem:[%s237_s8 + $0x10] sm:$0xff] %v1803_v8 }
 0x277   : > { %v1791_v3 = vpop.f32.mrf.mxu1 }
 0x278   : > { %v1792_v13 = vadd.f32 %v1791_v3, %v1770_v34 }
 0x27a   : > { %v1802_v16 = vmul.f32 0.3, %v1792_v13 }
 0x27c   : > { %v1804_v18 = vadd.f32 %v1802_v16, %v2772_v15 }
 0x27e   : > { %2246 = vst [vmem:[%s237_s8 + $0x18] sm:$0xff] %v1804_v18 }
 0x27f   : > { %v1793_v44 = vpop.f32.mrf.mxu1 }
 0x280   : > { %2467 = shalt.err (!%p2464_p8)
}
 0x281   : > { %s2513_s16 = smov 128   ;;  %s2514_s7 = smov 8  }
 0x282   : > { %2356 = dma.vmem_to_hbm [thread:$0]  (%p2583_p5), %s1823_s13, 512, %s1825_s14, %s1809_s22, %s2513_s16, %s2513_s16, %s2514_s7  }
 0x283 PF: > { %p2368_p9 = scmp.ge.s32.totalorder %s2506_s21, 2  ;;  %s1839_s8 = sand.u32 1, %s2494_s18  }
 0x284   : > { %s1840_s9 = scalar_lea.sflag [#allocation4], %s1839_s8 }
 0x285   : > { %p2363_p10 = pnand %p2368_p9, %p2587_p6 }
 0x287   : > { %p2364_p11 = pneg %p2363_p10 }
 0x289   : > { %2489 = dma.done.wait (%p2364_p11), %s1840_s9, 512  }
 0x28a   : > { %2491 = vsyncadd (%p2364_p11), %s1840_s9, 4294966784  ;;  %p16_p12 = scmp.ge.s32.totalorder %s2570_s24, 4   ;;  %s3218_s18 = smov %s2498_s19 }
 0x28b   : > { %s3219_s19 = smov %s2502_s20  ;;  %s3220_s20 = smov %s2581_s27 }
 0x28c   : > { %s3221_s21 = smov %s2570_s24  ;;  %18 = sbr.rel (!%p16_p12) target bundleno = 4 (0x4), region = 82 }
 0x291   :  { %1846 = vsyncpa [#allocation3], 1 }
 0x292   :  { %1848 = vsyncpa [#allocation3 + $0x1], 1 }
 0x293   :  { %1849 = vsyncpa [#allocation4], 1 }
 0x294   :  { %1851 = vsyncpa [#allocation4 + $0x1], 1 }

</bundles_post_ra>
